<compile_context>
chip_gen: v5e
topology: v5e:2x2
jax: 0.10.0
libtpu: 0.0.40
codegen_flags: <defaults>
</compile_context>

<pallas_src>
import jax
import jax.numpy as jnp
from jax.experimental import pallas as pl
from jax.experimental.pallas import tpu as pltpu

EPS = 1e-5
CPAD = 128      # lane-dense channel padding (128 lanes per vreg)
QUANT = 16      # bf16 sublane-packing quantum for row tiles


def _round_up(x, m):
    return ((x + m - 1) // m) * m


def _row_tiling(rows, cap=1024):
    """Row tile (multiple of 16, <= cap) + padded row count.
    Ensures >= 2 grid steps when there is enough work (v7x dual-TC)."""
    tr = min(cap, _round_up(rows, QUANT))
    if rows >= 2 * QUANT and _round_up(rows, tr) // tr < 2:
        tr = _round_up((rows + 1) // 2, QUANT)
    rows_p = _round_up(rows, tr)
    return tr, rows_p


# ----------------------------- Pallas kernels -----------------------------

def _conv_pool_kernel(p_ref, w_ref, c_ref, o_ref):
    """Fused conv-matmul + bias + ReLU + eval-BN + 2x2 max-pool.

    p_ref: (4, TR, K) bf16 -- the four 2x2 pool partners as leading groups
    w_ref: (K, 128)  bf16
    c_ref: (8, 128)  f32  -- rows: [bias, bn_scale, bn_shift, 0...]
    o_ref: (TR, 128) bf16 -- pooled output
    """
    c = c_ref[...]
    b, s, t = c[0:1], c[1:2], c[2:3]
    w = w_ref[...]

    def act(g):
        y = jnp.dot(p_ref[g], w, preferred_element_type=jnp.float32)
        return jnp.maximum(y + b, 0.0) * s + t      # bias, ReLU, (Dropout id), BN

    o_ref[...] = jnp.maximum(jnp.maximum(act(0), act(1)),
                             jnp.maximum(act(2), act(3))).astype(o_ref.dtype)


def conv_bn_pool(patches4, w, consts, tr):
    """patches4:(4,Rp,K) bf16, w:(K,128) bf16, consts:(8,128) f32 -> (Rp,128) bf16."""
    _, rp, k = patches4.shape
    grid = (rp // tr,)
    return pl.pallas_call(
        _conv_pool_kernel,
        out_shape=jax.ShapeDtypeStruct((rp, CPAD), jnp.bfloat16),
        grid_spec=pltpu.PrefetchScalarGridSpec(
            num_scalar_prefetch=0,
            grid=grid,
            in_specs=[
                pl.BlockSpec((4, tr, k), lambda i: (0, i, 0)),
                pl.BlockSpec((k, CPAD), lambda i: (0, 0)),
                pl.BlockSpec((8, CPAD), lambda i: (0, 0)),
            ],
            out_specs=pl.BlockSpec((tr, CPAD), lambda i: (i, 0)),
        ),
        compiler_params=pltpu.CompilerParams(
            dimension_semantics=("parallel",)),
    )(patches4, w, consts)


def _classifier_kernel(x_ref, w1_ref, w2_ref, w3_ref, c_ref, o_ref):
    """fc1 -> ReLU -> (Dropout id) -> BN1d ; fc2 -> ReLU -> (Dropout id) -> BN1d ; fc3."""
    c = c_ref[...]
    b1, s1, t1 = c[0:1], c[1:2], c[2:3]
    b2, s2, t2 = c[3:4], c[4:5], c[5:6]
    b3 = c[6:7]
    y = jnp.dot(x_ref[...], w1_ref[...], preferred_element_type=jnp.float32)
    y = jnp.maximum(y + b1, 0.0) * s1 + t1
    y = jnp.dot(y.astype(jnp.bfloat16), w2_ref[...], preferred_element_type=jnp.float32)
    y = jnp.maximum(y + b2, 0.0) * s2 + t2
    y = jnp.dot(y.astype(jnp.bfloat16), w3_ref[...], preferred_element_type=jnp.float32)
    o_ref[...] = y + b3


def classifier_fused(x, w1, w2, w3, consts, tm):
    """x:(Mp,Kf) bf16; all three Linear(+BN) layers in one Pallas kernel."""
    mp, kf = x.shape
    grid = (mp // tm,)

    def fullspec(r, c):
        return pl.BlockSpec((r, c), lambda i: (0, 0))

    return pl.pallas_call(
        _classifier_kernel,
        out_shape=jax.ShapeDtypeStruct((mp, CPAD), jnp.float32),
        grid_spec=pltpu.PrefetchScalarGridSpec(
            num_scalar_prefetch=0,
            grid=grid,
            in_specs=[
                pl.BlockSpec((tm, kf), lambda i: (i, 0)),
                fullspec(kf, CPAD),
                fullspec(CPAD, CPAD),
                fullspec(CPAD, CPAD),
                fullspec(8, CPAD),
            ],
            out_specs=pl.BlockSpec((tm, CPAD), lambda i: (i, 0)),
        ),
        compiler_params=pltpu.CompilerParams(
            dimension_semantics=("parallel",)),
    )(x, w1, w2, w3, consts)


# ------------------------------- JAX glue ---------------------------------

def im2col_pool_order(x_nhwc, k, pad):
    """NHWC -> (4, N*Hp*Wp, Kpad) bf16 patches.

    Leading axis of 4 enumerates the (h%2, w%2) 2x2 max-pool partners so the
    conv kernel can pool in-register.  Columns are (ki, kj, c)-ordered to match
    the pre-transposed conv weights, zero-padded to a multiple of 128 lanes."""
    # TODO(synk): at large batch, replace this XLA-side patch expansion with an
    # in-kernel gather (grid axis over k*k with pl.Element/pl.ds offsets into
    # the padded NHWC input, accumulating into a VMEM scratch) to avoid the
    # 25x patch materialization in HBM.
    n, h, w, c = x_nhwc.shape
    xp = jnp.pad(x_nhwc, ((0, 0), (pad, pad), (pad, pad), (0, 0)))
    ho = h + 2 * pad - k + 1
    wo = w + 2 * pad - k + 1
    hp, wp = ho // 2, wo // 2
    views = [xp[:, di:di + ho, dj:dj + wo, :] for di in range(k) for dj in range(k)]
    p = jnp.stack(views, axis=3)                       # (N, Ho, Wo, k*k, C)
    p = p.reshape(n, hp, 2, wp, 2, k * k * c)
    p = p.transpose(2, 4, 0, 1, 3, 5)                  # (2, 2, N, Hp, Wp, k*k*C)
    p = p.reshape(4, n * hp * wp, k * k * c)
    kpad = _round_up(k * k * c, CPAD)
    if kpad > k * k * c:
        p = jnp.pad(p, ((0, 0), (0, 0), (0, kpad - k * k * c)))
    return p, hp, wp


def _bn_affine(bn):
    """Fold eval-mode BatchNorm into per-channel scale/shift."""
    gamma, beta, rmean, rvar = bn
    scale = gamma * jax.lax.rsqrt(rvar + EPS)
    shift = beta - rmean * scale
    return scale, shift


def _pack_consts(rows):
    """Pack per-channel vectors (len <= 128) into one (8, 128) f32 block."""
    out = jnp.zeros((8, CPAD), jnp.float32)
    for i, v in enumerate(rows):
        out = out.at[i, :v.shape[0]].set(v.astype(jnp.float32))
    return out


def _prep_conv_w(w):
    """torch (C_out, C_in, k, k) -> (Kpad, 128) bf16, (ki, kj, c) row order."""
    co, ci, k, _ = w.shape
    wt = jnp.transpose(w, (2, 3, 1, 0)).reshape(k * k * ci, co)
    kpad = _round_up(k * k * ci, CPAD)
    wt = jnp.pad(wt, ((0, kpad - k * k * ci), (0, CPAD - co)))
    return wt.astype(jnp.bfloat16)


def _prep_fc1_w(w):
    """torch fc1 (120, 400 = 16*5*5 c-major) -> (512, 128) bf16 matching the
    channel-last (h, w, c) flatten of the pooled conv2 output."""
    wt = w.reshape(120, 16, 5, 5).transpose(2, 3, 1, 0).reshape(400, 120)
    kpad = _round_up(400, CPAD)
    wt = jnp.pad(wt, ((0, kpad - 400), (0, CPAD - 120)))
    return wt.astype(jnp.bfloat16)


def _prep_fc_w(w):
    """torch (out, in) -> (128, 128) bf16 (zero-padded rows/cols)."""
    o, i = w.shape
    return jnp.pad(w.T, ((0, CPAD - i), (0, CPAD - o))).astype(jnp.bfloat16)


def prepare_params(p):
    """One-time weight relayout + BN folding (outside the hot path)."""
    s1, t1 = _bn_affine(p["bn1"])
    s2, t2 = _bn_affine(p["bn2"])
    s3, t3 = _bn_affine(p["bn3"])
    s4, t4 = _bn_affine(p["bn4"])
    return {
        "w1": _prep_conv_w(p["conv1_w"]),
        "c1": _pack_consts([p["conv1_b"], s1, t1]),
        "w2": _prep_conv_w(p["conv2_w"]),
        "c2": _pack_consts([p["conv2_b"], s2, t2]),
        "fw1": _prep_fc1_w(p["fc1_w"]),
        "fw2": _prep_fc_w(p["fc2_w"]),
        "fw3": _prep_fc_w(p["fc3_w"]),
        "fc": _pack_consts([p["fc1_b"], s3, t3, p["fc2_b"], s4, t4, p["fc3_b"]]),
    }


def init_params(key, c_in):
    ks = jax.random.split(key, 16)

    def w(k, shape, fan_in):
        return jax.random.normal(k, shape, jnp.float32) * (1.0 / jnp.sqrt(fan_in))

    def bn(k, c):
        k1, k2, k3, k4 = jax.random.split(k, 4)
        gamma = jax.random.uniform(k1, (c,), jnp.float32, 0.5, 1.5)
        beta = jax.random.normal(k2, (c,), jnp.float32) * 0.1
        rmean = jax.random.normal(k3, (c,), jnp.float32) * 0.1
        rvar = jax.random.uniform(k4, (c,), jnp.float32, 0.5, 1.5)
        return (gamma, beta, rmean, rvar)

    return {
        "conv1_w": w(ks[0], (6, c_in, 5, 5), c_in * 25),
        "conv1_b": jax.random.normal(ks[1], (6,), jnp.float32) * 0.1,
        "bn1": bn(ks[2], 6),
        "conv2_w": w(ks[3], (16, 6, 5, 5), 6 * 25),
        "conv2_b": jax.random.normal(ks[4], (16,), jnp.float32) * 0.1,
        "bn2": bn(ks[5], 16),
        "fc1_w": w(ks[6], (120, 400), 400),
        "fc1_b": jax.random.normal(ks[7], (120,), jnp.float32) * 0.1,
        "bn3": bn(ks[8], 120),
        "fc2_w": w(ks[9], (84, 120), 120),
        "fc2_b": jax.random.normal(ks[10], (84,), jnp.float32) * 0.1,
        "bn4": bn(ks[11], 84),
        "fc3_w": w(ks[12], (10, 84), 84),
        "fc3_b": jax.random.normal(ks[13], (10,), jnp.float32) * 0.1,
    }


@jax.jit
def lenet_forward(pp, x_nchw):
    n = x_nchw.shape[0]
    x = jnp.transpose(x_nchw, (0, 2, 3, 1)).astype(jnp.bfloat16)    # NHWC once

    # Conv2d(C_in,6,5,pad=2) -> ReLU -> Dropout(id) -> BN2d -> MaxPool2x2 (one kernel)
    p, hp, wp = im2col_pool_order(x, k=5, pad=2)                    # (4, R1, 128)
    r1 = n * hp * wp
    tr, rp = _row_tiling(r1)
    p = jnp.pad(p, ((0, 0), (0, rp - r1), (0, 0)))
    y = conv_bn_pool(p, pp["w1"], pp["c1"], tr)[:r1]                # (R1, 128) bf16

    # Conv2d(6,16,5) -> ReLU -> Dropout(id) -> BN2d -> MaxPool2x2 (one kernel)
    y = y[:, :6].reshape(n, hp, wp, 6)                              # real 6 channels only
    p, hp, wp = im2col_pool_order(y, k=5, pad=0)                    # (4, R2, 256)
    r2 = n * hp * wp
    tr, rp = _row_tiling(r2)
    p = jnp.pad(p, ((0, 0), (0, rp - r2), (0, 0)))
    y = conv_bn_pool(p, pp["w2"], pp["c2"], tr)[:r2]                # (R2, 128) bf16

    # Classifier: fc1+BN -> fc2+BN -> fc3, all in ONE Pallas kernel
    flat = 16 * hp * wp                                             # 400
    kf = _round_up(flat, CPAD)                                      # 512
    y = y[:, :16].reshape(n, flat)                                  # channel-last (h,w,c)
    y = jnp.pad(y, ((0, 0), (0, kf - flat)))
    tm, mp = _row_tiling(n)
    y = jnp.pad(y, ((0, mp - n), (0, 0)))
    y = classifier_fused(y, pp["fw1"], pp["fw2"], pp["fw3"], pp["fc"], tm)
    return y[:n, :10]


if __name__ == "__main__":
    key = jax.random.PRNGKey(0)
    kx, kp = jax.random.split(key)

    # LeNet geometry requires 28x28 spatial so flatten == 16*5*5 = 400.
    N, C_in, H, W = 2, 3, 28, 28
    x = jax.random.normal(kx, (N, C_in, H, W), jnp.float32)
    params = init_params(kp, C_in)
    prepped = prepare_params(params)        # one-time relayout / padding / bf16 / BN fold

    out = lenet_forward(prepped, x)
    jax.block_until_ready(out)
    assert out.shape == (N, 10) and out.dtype == jnp.float32
    assert bool(jnp.isfinite(out).all())
    print("KERNEL_OK")
</pallas_src>

<mosaic_0001>
module attributes {stable_mosaic.version = 11 : i64} {
  func.func @_conv_pool_kernel(%arg0: i32, %arg1: memref<4x208x128xbf16, #tpu.memory_space<vmem>>, %arg2: memref<128x128xbf16, #tpu.memory_space<vmem>>, %arg3: memref<8x128xf32, #tpu.memory_space<vmem>>, %arg4: memref<208x128xbf16, #tpu.memory_space<vmem>>) attributes {dimension_semantics = [#tpu.dimension_semantics<parallel>], iteration_bounds = array<i64: 2>, scalar_prefetch = 0 : i64, scratch_operands = 0 : i64, tpu.core_type = #tpu.core_type<tc>, window_params = [{transform_indices = @transform_0, window_bounds = array<i64: 4, 208, 128>}, {pipeline_mode = #tpu.pipeline_mode<synchronous>, transform_indices = @transform_1, window_bounds = array<i64: 128, 128>}, {pipeline_mode = #tpu.pipeline_mode<synchronous>, transform_indices = @transform_2, window_bounds = array<i64: 8, 128>}, {transform_indices = @transform_3, window_bounds = array<i64: 208, 128>}]} {
    %c0 = arith.constant 0 : index
    %c0_0 = arith.constant 0 : index
    %0 = vector.load %arg3[%c0, %c0_0] : memref<8x128xf32, #tpu.memory_space<vmem>>, vector<8x128xf32>
    %1 = vector.extract_strided_slice %0 {offsets = [0, 0], sizes = [1, 128], strides = [1, 1]} : vector<8x128xf32> to vector<1x128xf32>
    %2 = vector.extract_strided_slice %0 {offsets = [1, 0], sizes = [1, 128], strides = [1, 1]} : vector<8x128xf32> to vector<1x128xf32>
    %3 = vector.extract_strided_slice %0 {offsets = [2, 0], sizes = [1, 128], strides = [1, 1]} : vector<8x128xf32> to vector<1x128xf32>
    %c0_1 = arith.constant 0 : index
    %c0_2 = arith.constant 0 : index
    %4 = vector.load %arg2[%c0_1, %c0_2] : memref<128x128xbf16, #tpu.memory_space<vmem>>, vector<128x128xbf16>
    %c0_3 = arith.constant 0 : index
    %c0_4 = arith.constant 0 : index
    %c0_5 = arith.constant 0 : index
    %5 = vector.load %arg1[%c0_3, %c0_4, %c0_5] : memref<4x208x128xbf16, #tpu.memory_space<vmem>>, vector<1x208x128xbf16>
    %6 = vector.shape_cast %5 : vector<1x208x128xbf16> to vector<208x128xbf16>
    %cst = arith.constant dense<0.000000e+00> : vector<208x128xf32>
    %7 = tpu.matmul %6, %4, %cst {dimension_numbers = #tpu.dot_dimension_numbers<[1], [0], [0], [1], [0, 0, 1, 1], [], []>} : vector<208x128xbf16>, vector<128x128xbf16>, vector<208x128xf32> -> vector<208x128xf32>
    %8 = vector.broadcast %1 : vector<1x128xf32> to vector<208x128xf32>
    %9 = arith.addf %7, %8 : vector<208x128xf32>
    %cst_6 = arith.constant 0.000000e+00 : f32
    %10 = vector.broadcast %cst_6 : f32 to vector<208x128xf32>
    %11 = arith.maximumf %9, %10 : vector<208x128xf32>
    %12 = vector.broadcast %2 : vector<1x128xf32> to vector<208x128xf32>
    %13 = arith.mulf %11, %12 : vector<208x128xf32>
    %14 = vector.broadcast %3 : vector<1x128xf32> to vector<208x128xf32>
    %15 = arith.addf %13, %14 : vector<208x128xf32>
    %c1 = arith.constant 1 : index
    %c0_7 = arith.constant 0 : index
    %c0_8 = arith.constant 0 : index
    %16 = vector.load %arg1[%c1, %c0_7, %c0_8] : memref<4x208x128xbf16, #tpu.memory_space<vmem>>, vector<1x208x128xbf16>
    %17 = vector.shape_cast %16 : vector<1x208x128xbf16> to vector<208x128xbf16>
    %cst_9 = arith.constant dense<0.000000e+00> : vector<208x128xf32>
    %18 = tpu.matmul %17, %4, %cst_9 {dimension_numbers = #tpu.dot_dimension_numbers<[1], [0], [0], [1], [0, 0, 1, 1], [], []>} : vector<208x128xbf16>, vector<128x128xbf16>, vector<208x128xf32> -> vector<208x128xf32>
    %19 = vector.broadcast %1 : vector<1x128xf32> to vector<208x128xf32>
    %20 = arith.addf %18, %19 : vector<208x128xf32>
    %cst_10 = arith.constant 0.000000e+00 : f32
    %21 = vector.broadcast %cst_10 : f32 to vector<208x128xf32>
    %22 = arith.maximumf %20, %21 : vector<208x128xf32>
    %23 = vector.broadcast %2 : vector<1x128xf32> to vector<208x128xf32>
    %24 = arith.mulf %22, %23 : vector<208x128xf32>
    %25 = vector.broadcast %3 : vector<1x128xf32> to vector<208x128xf32>
    %26 = arith.addf %24, %25 : vector<208x128xf32>
    %27 = arith.maximumf %15, %26 : vector<208x128xf32>
    %c2 = arith.constant 2 : index
    %c0_11 = arith.constant 0 : index
    %c0_12 = arith.constant 0 : index
    %28 = vector.load %arg1[%c2, %c0_11, %c0_12] : memref<4x208x128xbf16, #tpu.memory_space<vmem>>, vector<1x208x128xbf16>
    %29 = vector.shape_cast %28 : vector<1x208x128xbf16> to vector<208x128xbf16>
    %cst_13 = arith.constant dense<0.000000e+00> : vector<208x128xf32>
    %30 = tpu.matmul %29, %4, %cst_13 {dimension_numbers = #tpu.dot_dimension_numbers<[1], [0], [0], [1], [0, 0, 1, 1], [], []>} : vector<208x128xbf16>, vector<128x128xbf16>, vector<208x128xf32> -> vector<208x128xf32>
    %31 = vector.broadcast %1 : vector<1x128xf32> to vector<208x128xf32>
    %32 = arith.addf %30, %31 : vector<208x128xf32>
    %cst_14 = arith.constant 0.000000e+00 : f32
    %33 = vector.broadcast %cst_14 : f32 to vector<208x128xf32>
    %34 = arith.maximumf %32, %33 : vector<208x128xf32>
    %35 = vector.broadcast %2 : vector<1x128xf32> to vector<208x128xf32>
    %36 = arith.mulf %34, %35 : vector<208x128xf32>
    %37 = vector.broadcast %3 : vector<1x128xf32> to vector<208x128xf32>
    %38 = arith.addf %36, %37 : vector<208x128xf32>
    %c3 = arith.constant 3 : index
    %c0_15 = arith.constant 0 : index
    %c0_16 = arith.constant 0 : index
    %39 = vector.load %arg1[%c3, %c0_15, %c0_16] : memref<4x208x128xbf16, #tpu.memory_space<vmem>>, vector<1x208x128xbf16>
    %40 = vector.shape_cast %39 : vector<1x208x128xbf16> to vector<208x128xbf16>
    %cst_17 = arith.constant dense<0.000000e+00> : vector<208x128xf32>
    %41 = tpu.matmul %40, %4, %cst_17 {dimension_numbers = #tpu.dot_dimension_numbers<[1], [0], [0], [1], [0, 0, 1, 1], [], []>} : vector<208x128xbf16>, vector<128x128xbf16>, vector<208x128xf32> -> vector<208x128xf32>
    %42 = vector.broadcast %1 : vector<1x128xf32> to vector<208x128xf32>
    %43 = arith.addf %41, %42 : vector<208x128xf32>
    %cst_18 = arith.constant 0.000000e+00 : f32
    %44 = vector.broadcast %cst_18 : f32 to vector<208x128xf32>
    %45 = arith.maximumf %43, %44 : vector<208x128xf32>
    %46 = vector.broadcast %2 : vector<1x128xf32> to vector<208x128xf32>
    %47 = arith.mulf %45, %46 : vector<208x128xf32>
    %48 = vector.broadcast %3 : vector<1x128xf32> to vector<208x128xf32>
    %49 = arith.addf %47, %48 : vector<208x128xf32>
    %50 = arith.maximumf %38, %49 : vector<208x128xf32>
    %51 = arith.maximumf %27, %50 : vector<208x128xf32>
    %52 = arith.truncf %51 : vector<208x128xf32> to vector<208x128xbf16>
    %c0_19 = arith.constant 0 : index
    %c0_20 = arith.constant 0 : index
    %53 = vector.load %arg4[%c0_19, %c0_20] : memref<208x128xbf16, #tpu.memory_space<vmem>>, vector<208x128xbf16>
    tpu.vector_store %arg4[%c0_19, %c0_20], %52 {strides = array<i32>} : memref<208x128xbf16, #tpu.memory_space<vmem>>, vector<208x128xbf16>,
    return
  }
  func.func @transform_0(%arg0: i32) -> (i32, i32, i32) {
    %c0_i32 = arith.constant 0 : i32
    %c0_i32_0 = arith.constant 0 : i32
    %c0_i32_1 = arith.constant 0 : i32
    return %c0_i32, %arg0, %c0_i32_0 : i32, i32, i32
  }
  func.func @transform_1(%arg0: i32) -> (i32, i32) {
    %c0_i32 = arith.constant 0 : i32
    %c0_i32_0 = arith.constant 0 : i32
    %c0_i32_1 = arith.constant 0 : i32
    return %c0_i32, %c0_i32_0 : i32, i32
  }
  func.func @transform_2(%arg0: i32) -> (i32, i32) {
    %c0_i32 = arith.constant 0 : i32
    %c0_i32_0 = arith.constant 0 : i32
    %c0_i32_1 = arith.constant 0 : i32
    return %c0_i32, %c0_i32_0 : i32, i32
  }
  func.func @transform_3(%arg0: i32) -> (i32, i32) {
    %c0_i32 = arith.constant 0 : i32
    %c0_i32_0 = arith.constant 0 : i32
    return %arg0, %c0_i32 : i32, i32
  }
}

module attributes {stable_mosaic.version = 11 : i64} {
  func.func @_conv_pool_kernel(%arg0: i32, %arg1: memref<4x32x256xbf16, #tpu.memory_space<vmem>>, %arg2: memref<256x128xbf16, #tpu.memory_space<vmem>>, %arg3: memref<8x128xf32, #tpu.memory_space<vmem>>, %arg4: memref<32x128xbf16, #tpu.memory_space<vmem>>) attributes {dimension_semantics = [#tpu.dimension_semantics<parallel>], iteration_bounds = array<i64: 2>, scalar_prefetch = 0 : i64, scratch_operands = 0 : i64, tpu.core_type = #tpu.core_type<tc>, window_params = [{transform_indices = @transform_0, window_bounds = array<i64: 4, 32, 256>}, {pipeline_mode = #tpu.pipeline_mode<synchronous>, transform_indices = @transform_1, window_bounds = array<i64: 256, 128>}, {pipeline_mode = #tpu.pipeline_mode<synchronous>, transform_indices = @transform_2, window_bounds = array<i64: 8, 128>}, {transform_indices = @transform_3, window_bounds = array<i64: 32, 128>}]} {
    %c0 = arith.constant 0 : index
    %c0_0 = arith.constant 0 : index
    %0 = vector.load %arg3[%c0, %c0_0] : memref<8x128xf32, #tpu.memory_space<vmem>>, vector<8x128xf32>
    %1 = vector.extract_strided_slice %0 {offsets = [0, 0], sizes = [1, 128], strides = [1, 1]} : vector<8x128xf32> to vector<1x128xf32>
    %2 = vector.extract_strided_slice %0 {offsets = [1, 0], sizes = [1, 128], strides = [1, 1]} : vector<8x128xf32> to vector<1x128xf32>
    %3 = vector.extract_strided_slice %0 {offsets = [2, 0], sizes = [1, 128], strides = [1, 1]} : vector<8x128xf32> to vector<1x128xf32>
    %c0_1 = arith.constant 0 : index
    %c0_2 = arith.constant 0 : index
    %4 = vector.load %arg2[%c0_1, %c0_2] : memref<256x128xbf16, #tpu.memory_space<vmem>>, vector<256x128xbf16>
    %c0_3 = arith.constant 0 : index
    %c0_4 = arith.constant 0 : index
    %c0_5 = arith.constant 0 : index
    %5 = vector.load %arg1[%c0_3, %c0_4, %c0_5] : memref<4x32x256xbf16, #tpu.memory_space<vmem>>, vector<1x32x256xbf16>
    %6 = vector.shape_cast %5 : vector<1x32x256xbf16> to vector<32x256xbf16>
    %cst = arith.constant dense<0.000000e+00> : vector<32x128xf32>
    %7 = tpu.matmul %6, %4, %cst {dimension_numbers = #tpu.dot_dimension_numbers<[1], [0], [0], [1], [0, 0, 1, 1], [], []>} : vector<32x256xbf16>, vector<256x128xbf16>, vector<32x128xf32> -> vector<32x128xf32>
    %8 = vector.broadcast %1 : vector<1x128xf32> to vector<32x128xf32>
    %9 = arith.addf %7, %8 : vector<32x128xf32>
    %cst_6 = arith.constant 0.000000e+00 : f32
    %10 = vector.broadcast %cst_6 : f32 to vector<32x128xf32>
    %11 = arith.maximumf %9, %10 : vector<32x128xf32>
    %12 = vector.broadcast %2 : vector<1x128xf32> to vector<32x128xf32>
    %13 = arith.mulf %11, %12 : vector<32x128xf32>
    %14 = vector.broadcast %3 : vector<1x128xf32> to vector<32x128xf32>
    %15 = arith.addf %13, %14 : vector<32x128xf32>
    %c1 = arith.constant 1 : index
    %c0_7 = arith.constant 0 : index
    %c0_8 = arith.constant 0 : index
    %16 = vector.load %arg1[%c1, %c0_7, %c0_8] : memref<4x32x256xbf16, #tpu.memory_space<vmem>>, vector<1x32x256xbf16>
    %17 = vector.shape_cast %16 : vector<1x32x256xbf16> to vector<32x256xbf16>
    %cst_9 = arith.constant dense<0.000000e+00> : vector<32x128xf32>
    %18 = tpu.matmul %17, %4, %cst_9 {dimension_numbers = #tpu.dot_dimension_numbers<[1], [0], [0], [1], [0, 0, 1, 1], [], []>} : vector<32x256xbf16>, vector<256x128xbf16>, vector<32x128xf32> -> vector<32x128xf32>
    %19 = vector.broadcast %1 : vector<1x128xf32> to vector<32x128xf32>
    %20 = arith.addf %18, %19 : vector<32x128xf32>
    %cst_10 = arith.constant 0.000000e+00 : f32
    %21 = vector.broadcast %cst_10 : f32 to vector<32x128xf32>
    %22 = arith.maximumf %20, %21 : vector<32x128xf32>
    %23 = vector.broadcast %2 : vector<1x128xf32> to vector<32x128xf32>
    %24 = arith.mulf %22, %23 : vector<32x128xf32>
    %25 = vector.broadcast %3 : vector<1x128xf32> to vector<32x128xf32>
    %26 = arith.addf %24, %25 : vector<32x128xf32>
    %27 = arith.maximumf %15, %26 : vector<32x128xf32>
    %c2 = arith.constant 2 : index
    %c0_11 = arith.constant 0 : index
    %c0_12 = arith.constant 0 : index
    %28 = vector.load %arg1[%c2, %c0_11, %c0_12] : memref<4x32x256xbf16, #tpu.memory_space<vmem>>, vector<1x32x256xbf16>
    %29 = vector.shape_cast %28 : vector<1x32x256xbf16> to vector<32x256xbf16>
    %cst_13 = arith.constant dense<0.000000e+00> : vector<32x128xf32>
    %30 = tpu.matmul %29, %4, %cst_13 {dimension_numbers = #tpu.dot_dimension_numbers<[1], [0], [0], [1], [0, 0, 1, 1], [], []>} : vector<32x256xbf16>, vector<256x128xbf16>, vector<32x128xf32> -> vector<32x128xf32>
    %31 = vector.broadcast %1 : vector<1x128xf32> to vector<32x128xf32>
    %32 = arith.addf %30, %31 : vector<32x128xf32>
    %cst_14 = arith.constant 0.000000e+00 : f32
    %33 = vector.broadcast %cst_14 : f32 to vector<32x128xf32>
    %34 = arith.maximumf %32, %33 : vector<32x128xf32>
    %35 = vector.broadcast %2 : vector<1x128xf32> to vector<32x128xf32>
    %36 = arith.mulf %34, %35 : vector<32x128xf32>
    %37 = vector.broadcast %3 : vector<1x128xf32> to vector<32x128xf32>
    %38 = arith.addf %36, %37 : vector<32x128xf32>
    %c3 = arith.constant 3 : index
    %c0_15 = arith.constant 0 : index
    %c0_16 = arith.constant 0 : index
    %39 = vector.load %arg1[%c3, %c0_15, %c0_16] : memref<4x32x256xbf16, #tpu.memory_space<vmem>>, vector<1x32x256xbf16>
    %40 = vector.shape_cast %39 : vector<1x32x256xbf16> to vector<32x256xbf16>
    %cst_17 = arith.constant dense<0.000000e+00> : vector<32x128xf32>
    %41 = tpu.matmul %40, %4, %cst_17 {dimension_numbers = #tpu.dot_dimension_numbers<[1], [0], [0], [1], [0, 0, 1, 1], [], []>} : vector<32x256xbf16>, vector<256x128xbf16>, vector<32x128xf32> -> vector<32x128xf32>
    %42 = vector.broadcast %1 : vector<1x128xf32> to vector<32x128xf32>
    %43 = arith.addf %41, %42 : vector<32x128xf32>
    %cst_18 = arith.constant 0.000000e+00 : f32
    %44 = vector.broadcast %cst_18 : f32 to vector<32x128xf32>
    %45 = arith.maximumf %43, %44 : vector<32x128xf32>
    %46 = vector.broadcast %2 : vector<1x128xf32> to vector<32x128xf32>
    %47 = arith.mulf %45, %46 : vector<32x128xf32>
    %48 = vector.broadcast %3 : vector<1x128xf32> to vector<32x128xf32>
    %49 = arith.addf %47, %48 : vector<32x128xf32>
    %50 = arith.maximumf %38, %49 : vector<32x128xf32>
    %51 = arith.maximumf %27, %50 : vector<32x128xf32>
    %52 = arith.truncf %51 : vector<32x128xf32> to vector<32x128xbf16>
    %c0_19 = arith.constant 0 : index
    %c0_20 = arith.constant 0 : index
    %53 = vector.load %arg4[%c0_19, %c0_20] : memref<32x128xbf16, #tpu.memory_space<vmem>>, vector<32x128xbf16>
    tpu.vector_store %arg4[%c0_19, %c0_20], %52 {strides = array<i32>} : memref<32x128xbf16, #tpu.memory_space<vmem>>, vector<32x128xbf16>,
    return
  }
  func.func @transform_0(%arg0: i32) -> (i32, i32, i32) {
    %c0_i32 = arith.constant 0 : i32
    %c0_i32_0 = arith.constant 0 : i32
    %c0_i32_1 = arith.constant 0 : i32
    return %c0_i32, %arg0, %c0_i32_0 : i32, i32, i32
  }
  func.func @transform_1(%arg0: i32) -> (i32, i32) {
    %c0_i32 = arith.constant 0 : i32
    %c0_i32_0 = arith.constant 0 : i32
    %c0_i32_1 = arith.constant 0 : i32
    return %c0_i32, %c0_i32_0 : i32, i32
  }
  func.func @transform_2(%arg0: i32) -> (i32, i32) {
    %c0_i32 = arith.constant 0 : i32
    %c0_i32_0 = arith.constant 0 : i32
    %c0_i32_1 = arith.constant 0 : i32
    return %c0_i32, %c0_i32_0 : i32, i32
  }
  func.func @transform_3(%arg0: i32) -> (i32, i32) {
    %c0_i32 = arith.constant 0 : i32
    %c0_i32_0 = arith.constant 0 : i32
    return %arg0, %c0_i32 : i32, i32
  }
}

module attributes {stable_mosaic.version = 11 : i64} {
  func.func @_classifier_kernel(%arg0: i32, %arg1: memref<16x512xbf16, #tpu.memory_space<vmem>>, %arg2: memref<512x128xbf16, #tpu.memory_space<vmem>>, %arg3: memref<128x128xbf16, #tpu.memory_space<vmem>>, %arg4: memref<128x128xbf16, #tpu.memory_space<vmem>>, %arg5: memref<8x128xf32, #tpu.memory_space<vmem>>, %arg6: memref<16x128xf32, #tpu.memory_space<vmem>>) attributes {dimension_semantics = [#tpu.dimension_semantics<parallel>], iteration_bounds = array<i64: 1>, scalar_prefetch = 0 : i64, scratch_operands = 0 : i64, tpu.core_type = #tpu.core_type<tc>, window_params = [{transform_indices = @transform_0, window_bounds = array<i64: 16, 512>}, {pipeline_mode = #tpu.pipeline_mode<synchronous>, transform_indices = @transform_1, window_bounds = array<i64: 512, 128>}, {pipeline_mode = #tpu.pipeline_mode<synchronous>, transform_indices = @transform_2, window_bounds = array<i64: 128, 128>}, {pipeline_mode = #tpu.pipeline_mode<synchronous>, transform_indices = @transform_3, window_bounds = array<i64: 128, 128>}, {pipeline_mode = #tpu.pipeline_mode<synchronous>, transform_indices = @transform_4, window_bounds = array<i64: 8, 128>}, {transform_indices = @transform_5, window_bounds = array<i64: 16, 128>}]} {
    %c0 = arith.constant 0 : index
    %c0_0 = arith.constant 0 : index
    %0 = vector.load %arg5[%c0, %c0_0] : memref<8x128xf32, #tpu.memory_space<vmem>>, vector<8x128xf32>
    %1 = vector.extract_strided_slice %0 {offsets = [0, 0], sizes = [1, 128], strides = [1, 1]} : vector<8x128xf32> to vector<1x128xf32>
    %2 = vector.extract_strided_slice %0 {offsets = [1, 0], sizes = [1, 128], strides = [1, 1]} : vector<8x128xf32> to vector<1x128xf32>
    %3 = vector.extract_strided_slice %0 {offsets = [2, 0], sizes = [1, 128], strides = [1, 1]} : vector<8x128xf32> to vector<1x128xf32>
    %4 = vector.extract_strided_slice %0 {offsets = [3, 0], sizes = [1, 128], strides = [1, 1]} : vector<8x128xf32> to vector<1x128xf32>
    %5 = vector.extract_strided_slice %0 {offsets = [4, 0], sizes = [1, 128], strides = [1, 1]} : vector<8x128xf32> to vector<1x128xf32>
    %6 = vector.extract_strided_slice %0 {offsets = [5, 0], sizes = [1, 128], strides = [1, 1]} : vector<8x128xf32> to vector<1x128xf32>
    %7 = vector.extract_strided_slice %0 {offsets = [6, 0], sizes = [1, 128], strides = [1, 1]} : vector<8x128xf32> to vector<1x128xf32>
    %c0_1 = arith.constant 0 : index
    %c0_2 = arith.constant 0 : index
    %8 = vector.load %arg1[%c0_1, %c0_2] : memref<16x512xbf16, #tpu.memory_space<vmem>>, vector<16x512xbf16>
    %c0_3 = arith.constant 0 : index
    %c0_4 = arith.constant 0 : index
    %9 = vector.load %arg2[%c0_3, %c0_4] : memref<512x128xbf16, #tpu.memory_space<vmem>>, vector<512x128xbf16>
    %cst = arith.constant dense<0.000000e+00> : vector<16x128xf32>
    %10 = tpu.matmul %8, %9, %cst {dimension_numbers = #tpu.dot_dimension_numbers<[1], [0], [0], [1], [0, 0, 1, 1], [], []>} : vector<16x512xbf16>, vector<512x128xbf16>, vector<16x128xf32> -> vector<16x128xf32>
    %11 = vector.broadcast %1 : vector<1x128xf32> to vector<16x128xf32>
    %12 = arith.addf %10, %11 : vector<16x128xf32>
    %cst_5 = arith.constant 0.000000e+00 : f32
    %13 = vector.broadcast %cst_5 : f32 to vector<16x128xf32>
    %14 = arith.maximumf %12, %13 : vector<16x128xf32>
    %15 = vector.broadcast %2 : vector<1x128xf32> to vector<16x128xf32>
    %16 = arith.mulf %14, %15 : vector<16x128xf32>
    %17 = vector.broadcast %3 : vector<1x128xf32> to vector<16x128xf32>
    %18 = arith.addf %16, %17 : vector<16x128xf32>
    %19 = arith.truncf %18 : vector<16x128xf32> to vector<16x128xbf16>
    %c0_6 = arith.constant 0 : index
    %c0_7 = arith.constant 0 : index
    %20 = vector.load %arg3[%c0_6, %c0_7] : memref<128x128xbf16, #tpu.memory_space<vmem>>, vector<128x128xbf16>
    %cst_8 = arith.constant dense<0.000000e+00> : vector<16x128xf32>
    %21 = tpu.matmul %19, %20, %cst_8 {dimension_numbers = #tpu.dot_dimension_numbers<[1], [0], [0], [1], [0, 0, 1, 1], [], []>} : vector<16x128xbf16>, vector<128x128xbf16>, vector<16x128xf32> -> vector<16x128xf32>
    %22 = vector.broadcast %4 : vector<1x128xf32> to vector<16x128xf32>
    %23 = arith.addf %21, %22 : vector<16x128xf32>
    %cst_9 = arith.constant 0.000000e+00 : f32
    %24 = vector.broadcast %cst_9 : f32 to vector<16x128xf32>
    %25 = arith.maximumf %23, %24 : vector<16x128xf32>
    %26 = vector.broadcast %5 : vector<1x128xf32> to vector<16x128xf32>
    %27 = arith.mulf %25, %26 : vector<16x128xf32>
    %28 = vector.broadcast %6 : vector<1x128xf32> to vector<16x128xf32>
    %29 = arith.addf %27, %28 : vector<16x128xf32>
    %30 = arith.truncf %29 : vector<16x128xf32> to vector<16x128xbf16>
    %c0_10 = arith.constant 0 : index
    %c0_11 = arith.constant 0 : index
    %31 = vector.load %arg4[%c0_10, %c0_11] : memref<128x128xbf16, #tpu.memory_space<vmem>>, vector<128x128xbf16>
    %cst_12 = arith.constant dense<0.000000e+00> : vector<16x128xf32>
    %32 = tpu.matmul %30, %31, %cst_12 {dimension_numbers = #tpu.dot_dimension_numbers<[1], [0], [0], [1], [0, 0, 1, 1], [], []>} : vector<16x128xbf16>, vector<128x128xbf16>, vector<16x128xf32> -> vector<16x128xf32>
    %33 = vector.broadcast %7 : vector<1x128xf32> to vector<16x128xf32>
    %34 = arith.addf %32, %33 : vector<16x128xf32>
    %c0_13 = arith.constant 0 : index
    %c0_14 = arith.constant 0 : index
    %35 = vector.load %arg6[%c0_13, %c0_14] : memref<16x128xf32, #tpu.memory_space<vmem>>, vector<16x128xf32>
    tpu.vector_store %arg6[%c0_13, %c0_14], %34 {strides = array<i32>} : memref<16x128xf32, #tpu.memory_space<vmem>>, vector<16x128xf32>,
    return
  }
  func.func @transform_0(%arg0: i32) -> (i32, i32) {
    %c0_i32 = arith.constant 0 : i32
    %c0_i32_0 = arith.constant 0 : i32
    return %arg0, %c0_i32 : i32, i32
  }
  func.func @transform_1(%arg0: i32) -> (i32, i32) {
    %c0_i32 = arith.constant 0 : i32
    %c0_i32_0 = arith.constant 0 : i32
    %c0_i32_1 = arith.constant 0 : i32
    return %c0_i32, %c0_i32_0 : i32, i32
  }
  func.func @transform_2(%arg0: i32) -> (i32, i32) {
    %c0_i32 = arith.constant 0 : i32
    %c0_i32_0 = arith.constant 0 : i32
    %c0_i32_1 = arith.constant 0 : i32
    return %c0_i32, %c0_i32_0 : i32, i32
  }
  func.func @transform_3(%arg0: i32) -> (i32, i32) {
    %c0_i32 = arith.constant 0 : i32
    %c0_i32_0 = arith.constant 0 : i32
    %c0_i32_1 = arith.constant 0 : i32
    return %c0_i32, %c0_i32_0 : i32, i32
  }
  func.func @transform_4(%arg0: i32) -> (i32, i32) {
    %c0_i32 = arith.constant 0 : i32
    %c0_i32_0 = arith.constant 0 : i32
    %c0_i32_1 = arith.constant 0 : i32
    return %c0_i32, %c0_i32_0 : i32, i32
  }
  func.func @transform_5(%arg0: i32) -> (i32, i32) {
    %c0_i32 = arith.constant 0 : i32
    %c0_i32_0 = arith.constant 0 : i32
    return %arg0, %c0_i32 : i32, i32
  }
}

</mosaic_0001>

<bundles_post_ra>
// kernel: lenet_forward.3
= control target key start
LH: loop header
LB: loop body
LE: loop exit
PB: predicated region body
PF: predicated region fallthrough
CT: control target
= control target key end

     0   :  { %s2451_s12 = smov 0   ;;  %s2453_s13 = smov 0   ;;  %s3031_s0 = inlined_call_operand.vmem [shape: bf16[4,416,128], index: 0, kind: input, shape index: {}]   ;;  %s3032_s1 = inlined_call_operand.vmem [shape: bf16[128,128], index: 1, kind: input, shape index: {}]   ;;  %s3033_s2 = inlined_call_operand.vmem [shape: f32[8,128], index: 2, kind: input, shape index: {}]   ;;  %s3034_s3 = inlined_call_operand.vmem [shape: bf16[416,128], index: 3, kind: output, shape index: {}]  }
   0x1   :  { %s2455_s14 = smov 0  }
   0x2 LB: > { %s1916_s15 = sadd.s32 4294967295, %s2429_s14   ;;  %s2468_s16 = sadd.s32 1, %s2429_s14   ;;  %s2429_s14 = sphi %s2455_s14, %s3037_s14   ;;  %s2425_s13 = sphi %s2453_s13, %s3036_s13   ;;  %s2421_s12 = sphi %s2451_s12, %s3035_s12  }
   0x3   : > { %s17_s17 = ssub.s32 %s2429_s14, %s2468_s16  ;;  %s20_s18 = sadd.s32 1, %s2425_s13 }
   0x4   : > { %p18_p0 = scmp.eq.s32.totalorder %s17_s17, 0  ;;  %p27_p1 = scmp.ne.s32.totalorder %s2425_s13, %s2421_s12 }
   0x5   : > { %p28_p2 = scmp.eq.s32.totalorder %s2429_s14, 0  ;;  %p1919_p4 = scmp.ge.s32.totalorder %s2429_s14, 2 }
   0x6   : > { %s2477_s19 = scalar_select %p18_p0, %s2425_s13, %s20_s18  }
   0x7   : > { %p29_p3 = por %p28_p2, %p27_p1  ;;  %127 = sbr.rel (%p1919_p4) target bundleno = 69 (0x45), region = 24 }
   0xc   : > { %130 = sbr.rel (!%p29_p3) target bundleno = 69 (0x45), region = 28  ;;  %s132_s20 = sand.u32 (%p29_p3), 1, %s2425_s13  }
   0xd   : > { %s2243_s21 = smul.u32 (%p29_p3), 104, %s2429_s14 }
   0xe   : > { %s2381_s22 = smul.u32 (%p29_p3), 416, %s132_s20 }
   0xf   : > { %s2485_s25 = scalar_lea.vmem (%p29_p3), %s3031_s0, %s2243_s21 }
  0x10   : > { %v154_v0 = vld [vmem:[%s2485_s25] sm:$0xff] (%p29_p3)   ;;  %v158_v1 = vld [vmem:[%s2485_s25 + $0x8] sm:$0xff] (%p29_p3)   ;;  %v162_v2 = vld [vmem:[%s2485_s25 + $0x10] sm:$0xff] (%p29_p3)   ;;  %s2490_s26 = scalar_lea.vmem (%p29_p3), [#allocation2], %s2381_s22 }
  0x11   : > { %155 = vst [vmem:[%s2490_s26] sm:$0xff] %v154_v0   ;;  %v166_v3 = vld [vmem:[%s2485_s25 + $0x18] sm:$0xff]   ;;  %v170_v4 = vld [vmem:[%s2485_s25 + $0x20] sm:$0xff]   ;;  %v174_v5 = vld [vmem:[%s2485_s25 + $0x28] sm:$0xff]  }
  0x12   : > { %159 = vst [vmem:[%s2490_s26 + $0x8] sm:$0xff] %v158_v1   ;;  %v178_v6 = vld [vmem:[%s2485_s25 + $0x30] sm:$0xff]   ;;  %v182_v7 = vld [vmem:[%s2485_s25 + $0x38] sm:$0xff]   ;;  %v186_v8 = vld [vmem:[%s2485_s25 + $0x40] sm:$0xff]  }
  0x13   : > { %163 = vst [vmem:[%s2490_s26 + $0x10] sm:$0xff] %v162_v2   ;;  %v190_v9 = vld [vmem:[%s2485_s25 + $0x48] sm:$0xff]   ;;  %v194_v10 = vld [vmem:[%s2485_s25 + $0x50] sm:$0xff]   ;;  %v198_v11 = vld [vmem:[%s2485_s25 + $0x58] sm:$0xff]  }
  0x14   : > { %167 = vst [vmem:[%s2490_s26 + $0x18] sm:$0xff] %v166_v3   ;;  %v202_v12 = vld [vmem:[%s2485_s25 + $0x60] sm:$0xff]   ;;  %v206_v13 = vld [vmem:[%s2485_s25 + $0xd0] sm:$0xff]   ;;  %v210_v14 = vld [vmem:[%s2485_s25 + $0xd8] sm:$0xff]  }
  0x15   : > { %171 = vst [vmem:[%s2490_s26 + $0x20] sm:$0xff] %v170_v4   ;;  %v214_v15 = vld [vmem:[%s2485_s25 + $0xe0] sm:$0xff]   ;;  %v218_v16 = vld [vmem:[%s2485_s25 + $0xe8] sm:$0xff]   ;;  %v222_v17 = vld [vmem:[%s2485_s25 + $0xf0] sm:$0xff]  }
  0x16   : > { %175 = vst [vmem:[%s2490_s26 + $0x28] sm:$0xff] %v174_v5   ;;  %v226_v18 = vld [vmem:[%s2485_s25 + $0xf8] sm:$0xff]   ;;  %v230_v19 = vld [vmem:[%s2485_s25 + $0x100] sm:$0xff]   ;;  %v234_v20 = vld [vmem:[%s2485_s25 + $0x108] sm:$0xff]  }
  0x17   : > { %179 = vst [vmem:[%s2490_s26 + $0x30] sm:$0xff] %v178_v6   ;;  %v238_v21 = vld [vmem:[%s2485_s25 + $0x110] sm:$0xff]   ;;  %v242_v22 = vld [vmem:[%s2485_s25 + $0x118] sm:$0xff]   ;;  %v246_v23 = vld [vmem:[%s2485_s25 + $0x120] sm:$0xff]  }
  0x18   : > { %183 = vst [vmem:[%s2490_s26 + $0x38] sm:$0xff] %v182_v7   ;;  %v250_v24 = vld [vmem:[%s2485_s25 + $0x128] sm:$0xff]   ;;  %v254_v25 = vld [vmem:[%s2485_s25 + $0x130] sm:$0xff]   ;;  %v258_v26 = vld [vmem:[%s2485_s25 + $0x1a0] sm:$0xff]  }
  0x19   : > { %187 = vst [vmem:[%s2490_s26 + $0x40] sm:$0xff] %v186_v8   ;;  %v262_v27 = vld [vmem:[%s2485_s25 + $0x1a8] sm:$0xff]   ;;  %v266_v28 = vld [vmem:[%s2485_s25 + $0x1b0] sm:$0xff]   ;;  %v270_v29 = vld [vmem:[%s2485_s25 + $0x1b8] sm:$0xff]  }
  0x1a   : > { %191 = vst [vmem:[%s2490_s26 + $0x48] sm:$0xff] %v190_v9   ;;  %v274_v30 = vld [vmem:[%s2485_s25 + $0x1c0] sm:$0xff]   ;;  %v278_v31 = vld [vmem:[%s2485_s25 + $0x1c8] sm:$0xff]   ;;  %v282_v32 = vld [vmem:[%s2485_s25 + $0x1d0] sm:$0xff]  }
  0x1b   : > { %195 = vst [vmem:[%s2490_s26 + $0x50] sm:$0xff] %v194_v10   ;;  %v286_v33 = vld [vmem:[%s2485_s25 + $0x1d8] sm:$0xff]   ;;  %v290_v34 = vld [vmem:[%s2485_s25 + $0x1e0] sm:$0xff]   ;;  %v294_v35 = vld [vmem:[%s2485_s25 + $0x1e8] sm:$0xff]  }
  0x1c   : > { %199 = vst [vmem:[%s2490_s26 + $0x58] sm:$0xff] %v198_v11   ;;  %v298_v36 = vld [vmem:[%s2485_s25 + $0x1f0] sm:$0xff]   ;;  %v302_v37 = vld [vmem:[%s2485_s25 + $0x1f8] sm:$0xff]   ;;  %v306_v38 = vld [vmem:[%s2485_s25 + $0x200] sm:$0xff]  }
  0x1d   : > { %203 = vst [vmem:[%s2490_s26 + $0x60] sm:$0xff] %v202_v12   ;;  %v310_v39 = vld [vmem:[%s2485_s25 + $0x270] sm:$0xff]   ;;  %v314_v40 = vld [vmem:[%s2485_s25 + $0x278] sm:$0xff]   ;;  %v318_v41 = vld [vmem:[%s2485_s25 + $0x280] sm:$0xff]  }
  0x1e   : > { %207 = vst [vmem:[%s2490_s26 + $0x68] sm:$0xff] %v206_v13   ;;  %v322_v42 = vld [vmem:[%s2485_s25 + $0x288] sm:$0xff]   ;;  %v326_v43 = vld [vmem:[%s2485_s25 + $0x290] sm:$0xff]   ;;  %v330_v44 = vld [vmem:[%s2485_s25 + $0x298] sm:$0xff]  }
  0x1f   : > { %211 = vst [vmem:[%s2490_s26 + $0x70] sm:$0xff] %v210_v14   ;;  %v334_v45 = vld [vmem:[%s2485_s25 + $0x2a0] sm:$0xff]   ;;  %v338_v46 = vld [vmem:[%s2485_s25 + $0x2a8] sm:$0xff]   ;;  %v342_v47 = vld [vmem:[%s2485_s25 + $0x2b0] sm:$0xff]  }
  0x20   : > { %215 = vst [vmem:[%s2490_s26 + $0x78] sm:$0xff] %v214_v15   ;;  %v346_v48 = vld [vmem:[%s2485_s25 + $0x2b8] sm:$0xff]   ;;  %v350_v49 = vld [vmem:[%s2485_s25 + $0x2c0] sm:$0xff]   ;;  %v354_v50 = vld [vmem:[%s2485_s25 + $0x2c8] sm:$0xff]  }
  0x21   : > { %219 = vst [vmem:[%s2490_s26 + $0x80] sm:$0xff] %v218_v16   ;;  %v358_v51 = vld [vmem:[%s2485_s25 + $0x2d0] sm:$0xff]  }
  0x22   : > { %223 = vst [vmem:[%s2490_s26 + $0x88] sm:$0xff] %v222_v17  }
  0x23   : > { %227 = vst [vmem:[%s2490_s26 + $0x90] sm:$0xff] %v226_v18  }
  0x24   : > { %231 = vst [vmem:[%s2490_s26 + $0x98] sm:$0xff] %v230_v19  }
  0x25   : > { %235 = vst [vmem:[%s2490_s26 + $0xa0] sm:$0xff] %v234_v20  }
  0x26   : > { %239 = vst [vmem:[%s2490_s26 + $0xa8] sm:$0xff] %v238_v21  }
  0x27   : > { %243 = vst [vmem:[%s2490_s26 + $0xb0] sm:$0xff] %v242_v22  }
  0x28   : > { %247 = vst [vmem:[%s2490_s26 + $0xb8] sm:$0xff] %v246_v23  }
  0x29   : > { %251 = vst [vmem:[%s2490_s26 + $0xc0] sm:$0xff] %v250_v24  }
  0x2a   : > { %255 = vst [vmem:[%s2490_s26 + $0xc8] sm:$0xff] %v254_v25  }
  0x2b   : > { %259 = vst [vmem:[%s2490_s26 + $0xd0] sm:$0xff] %v258_v26  }
  0x2c   : > { %263 = vst [vmem:[%s2490_s26 + $0xd8] sm:$0xff] %v262_v27  }
  0x2d   : > { %267 = vst [vmem:[%s2490_s26 + $0xe0] sm:$0xff] %v266_v28  }
  0x2e   : > { %271 = vst [vmem:[%s2490_s26 + $0xe8] sm:$0xff] %v270_v29  }
  0x2f   : > { %275 = vst [vmem:[%s2490_s26 + $0xf0] sm:$0xff] %v274_v30  }
  0x30   : > { %279 = vst [vmem:[%s2490_s26 + $0xf8] sm:$0xff] %v278_v31  }
  0x31   : > { %283 = vst [vmem:[%s2490_s26 + $0x100] sm:$0xff] %v282_v32  }
  0x32   : > { %287 = vst [vmem:[%s2490_s26 + $0x108] sm:$0xff] %v286_v33  }
  0x33   : > { %291 = vst [vmem:[%s2490_s26 + $0x110] sm:$0xff] %v290_v34  }
  0x34   : > { %295 = vst [vmem:[%s2490_s26 + $0x118] sm:$0xff] %v294_v35  }
  0x35   : > { %299 = vst [vmem:[%s2490_s26 + $0x120] sm:$0xff] %v298_v36  }
  0x36   : > { %303 = vst [vmem:[%s2490_s26 + $0x128] sm:$0xff] %v302_v37  }
  0x37   : > { %307 = vst [vmem:[%s2490_s26 + $0x130] sm:$0xff] %v306_v38  }
  0x38   : > { %311 = vst [vmem:[%s2490_s26 + $0x138] sm:$0xff] %v310_v39  }
  0x39   : > { %315 = vst [vmem:[%s2490_s26 + $0x140] sm:$0xff] %v314_v40  }
  0x3a   : > { %319 = vst [vmem:[%s2490_s26 + $0x148] sm:$0xff] %v318_v41  }
  0x3b   : > { %323 = vst [vmem:[%s2490_s26 + $0x150] sm:$0xff] %v322_v42  }
  0x3c   : > { %327 = vst [vmem:[%s2490_s26 + $0x158] sm:$0xff] %v326_v43  }
  0x3d   : > { %331 = vst [vmem:[%s2490_s26 + $0x160] sm:$0xff] %v330_v44  }
  0x3e   : > { %335 = vst [vmem:[%s2490_s26 + $0x168] sm:$0xff] %v334_v45  }
  0x3f   : > { %339 = vst [vmem:[%s2490_s26 + $0x170] sm:$0xff] %v338_v46  }
  0x40   : > { %343 = vst [vmem:[%s2490_s26 + $0x178] sm:$0xff] %v342_v47  }
  0x41   : > { %347 = vst [vmem:[%s2490_s26 + $0x180] sm:$0xff] %v346_v48  }
  0x42   : > { %351 = vst [vmem:[%s2490_s26 + $0x188] sm:$0xff] %v350_v49  }
  0x43   : > { %355 = vst [vmem:[%s2490_s26 + $0x190] sm:$0xff] %v354_v50  }
  0x44   : > { %359 = vst [vmem:[%s2490_s26 + $0x198] sm:$0xff] %v358_v51  }
  0x45 PF: > { %p1921_p5 = scmp.ge.s32.totalorder %s2429_s14, 1  ;;  %p592_p6 = scmp.lt.s32.totalorder %s2429_s14, 3 }
  0x47   : > { %p593_p7 = pnand %p1921_p5, %p592_p6 }
  0x48   : > { %s599_s17 = sand.u32 (!%p593_p7), 1, %s2421_s12   ;;  %s2673_s26 = smul.u32 (!%p593_p7), 26, %s1916_s15 }
  0x49   : > { %596 = sbr.rel (%p593_p7) target bundleno = 458 (0x1ca), region = 69 }
  0x4a   : > { %s2382_s21 = smul.u32 (!%p593_p7), 416, %s599_s17  ;;  %p624_p8 = scmp.lt.s32.totalorder (!%p593_p7), %s2673_s26, 51 }
  0x4c   : > { %s2620_s24 = scalar_lea.vmem (!%p593_p7), [#allocation2], %s2382_s21 }
  0x4e   : > { %v2251_v52 = vld [vmem:[%s3032_s1 + $0x38] sm:$0xff]  ;;  %v2250_v53 = vld [vmem:[%s3032_s1 + $0x30] sm:$0xff]  ;;  %v2249_v54 = vld [vmem:[%s3032_s1 + $0x28] sm:$0xff]  ;;  %s3039_s26 = smov (!%p624_p8, %s2673_s26), 51 }
  0x4f   : > { %799 = vmatpush.bf16.msra.mxu0 %v2251_v52  ;;  %1058 = vmatpush.bf16.msra.mxu1 %v2251_v52  ;;  %v2248_v55 = vld [vmem:[%s3032_s1 + $0x20] sm:$0xff]  ;;  %v2247_v56 = vld [vmem:[%s3032_s1 + $0x18] sm:$0xff]  ;;  %v2246_v57 = vld [vmem:[%s3032_s1 + $0x10] sm:$0xff]  ;;  %s1922_s14 = sshll.u32 %s3039_s26, 2 }
  0x50   : > { %1341 = vmatpush.bf16.msra.mxu2 %v2251_v52  ;;  %1598 = vmatpush.bf16.msra.mxu3 %v2251_v52  ;;  %v2245_v58 = vld [vmem:[%s3032_s1 + $0x8] sm:$0xff]  ;;  %v2244_v59 = vld [vmem:[%s3032_s1] sm:$0xff]  ;;  %v2278_v62 = vld [vmem:[%s2620_s24 + $0xd0] sm:$0xff]  ;;  %s2712_s28 = scalar_lea.vmem %s3034_s3, %s1922_s14 }
  0x51   : > { %v2252_v60 = vld [vmem:[%s2620_s24] sm:$0xff]  ;;  %v2265_v61 = vld [vmem:[%s2620_s24 + $0x68] sm:$0xff]  ;;  %v2291_v63 = vld [vmem:[%s2620_s24 + $0x138] sm:$0xff] }
  0x52   : > { %v2253_v0 = vld [vmem:[%s2620_s24 + $0x8] sm:$0xff]  ;;  %v2266_v1 = vld [vmem:[%s2620_s24 + $0x70] sm:$0xff]  ;;  %v2279_v2 = vld [vmem:[%s2620_s24 + $0xd8] sm:$0xff] }
  0x53   : > { %800 = vmatpush.bf16.msra.mxu0 %v2250_v53  ;;  %1059 = vmatpush.bf16.msra.mxu1 %v2250_v53  ;;  %v2292_v3 = vld [vmem:[%s2620_s24 + $0x140] sm:$0xff]  ;;  %v2254_v4 = vld [vmem:[%s2620_s24 + $0x10] sm:$0xff]  ;;  %v2267_v5 = vld [vmem:[%s2620_s24 + $0x78] sm:$0xff] }
  0x54   : > { %1342 = vmatpush.bf16.msra.mxu2 %v2250_v53  ;;  %1599 = vmatpush.bf16.msra.mxu3 %v2250_v53  ;;  %v2280_v6 = vld [vmem:[%s2620_s24 + $0xe0] sm:$0xff]  ;;  %v2293_v7 = vld [vmem:[%s2620_s24 + $0x148] sm:$0xff]  ;;  %v2255_v8 = vld [vmem:[%s2620_s24 + $0x18] sm:$0xff] }
  0x55   : > { %v2268_v9 = vld [vmem:[%s2620_s24 + $0x80] sm:$0xff]  ;;  %v2281_v10 = vld [vmem:[%s2620_s24 + $0xe8] sm:$0xff]  ;;  %v2294_v11 = vld [vmem:[%s2620_s24 + $0x150] sm:$0xff] }
  0x56   : > { %v2256_v12 = vld [vmem:[%s2620_s24 + $0x20] sm:$0xff]  ;;  %v2269_v13 = vld [vmem:[%s2620_s24 + $0x88] sm:$0xff]  ;;  %v2282_v14 = vld [vmem:[%s2620_s24 + $0xf0] sm:$0xff] }
  0x57   : > { %801 = vmatpush.bf16.msra.mxu0 %v2249_v54  ;;  %1060 = vmatpush.bf16.msra.mxu1 %v2249_v54  ;;  %v2295_v15 = vld [vmem:[%s2620_s24 + $0x158] sm:$0xff]  ;;  %v2257_v16 = vld [vmem:[%s2620_s24 + $0x28] sm:$0xff]  ;;  %v2270_v17 = vld [vmem:[%s2620_s24 + $0x90] sm:$0xff] }
  0x58   : > { %1343 = vmatpush.bf16.msra.mxu2 %v2249_v54  ;;  %1600 = vmatpush.bf16.msra.mxu3 %v2249_v54  ;;  %v2283_v18 = vld [vmem:[%s2620_s24 + $0xf8] sm:$0xff]  ;;  %v2296_v19 = vld [vmem:[%s2620_s24 + $0x160] sm:$0xff]  ;;  %v2258_v20 = vld [vmem:[%s2620_s24 + $0x30] sm:$0xff] }
  0x59   : > { %v2271_v21 = vld [vmem:[%s2620_s24 + $0x98] sm:$0xff]  ;;  %v2284_v22 = vld [vmem:[%s2620_s24 + $0x100] sm:$0xff]  ;;  %v2297_v23 = vld [vmem:[%s2620_s24 + $0x168] sm:$0xff] }
  0x5a   : > { %v2259_v24 = vld [vmem:[%s2620_s24 + $0x38] sm:$0xff]  ;;  %v2272_v25 = vld [vmem:[%s2620_s24 + $0xa0] sm:$0xff]  ;;  %v2285_v26 = vld [vmem:[%s2620_s24 + $0x108] sm:$0xff] }
  0x5b   : > { %802 = vmatpush.bf16.msra.mxu0 %v2248_v55  ;;  %1061 = vmatpush.bf16.msra.mxu1 %v2248_v55  ;;  %v2298_v27 = vld [vmem:[%s2620_s24 + $0x170] sm:$0xff]  ;;  %v629_v28 = vld [vmem:[%s3033_s2] sm:$0xff]  ;;  %v2273_v30 = vld [vmem:[%s2620_s24 + $0xa8] sm:$0xff] }
  0x5c   : > { %1344 = vmatpush.bf16.msra.mxu2 %v2248_v55  ;;  %1601 = vmatpush.bf16.msra.mxu3 %v2248_v55  ;;  %v2260_v29 = vld [vmem:[%s2620_s24 + $0x40] sm:$0xff]  ;;  %v2286_v33 = vld [vmem:[%s2620_s24 + $0x110] sm:$0xff]  ;;  %v2299_v34 = vld [vmem:[%s2620_s24 + $0x178] sm:$0xff]  ;;  %v2661_v35 = vperm.slane %v629_v28, 0  ;;  %v2665_v40 = vperm.slane %v629_v28, 1  ;;  %v2676_v54 = vperm.slane %v629_v28, 2 }
  0x5f   : > { %803 = vmatpush.bf16.msra.mxu0 %v2247_v56  ;;  %1062 = vmatpush.bf16.msra.mxu1 %v2247_v56 }
  0x60   : > { %1345 = vmatpush.bf16.msra.mxu2 %v2247_v56  ;;  %1602 = vmatpush.bf16.msra.mxu3 %v2247_v56 }
  0x63   : > { %804 = vmatpush.bf16.msra.mxu0 %v2246_v57  ;;  %1063 = vmatpush.bf16.msra.mxu1 %v2246_v57 }
  0x64   : > { %1346 = vmatpush.bf16.msra.mxu2 %v2246_v57  ;;  %1603 = vmatpush.bf16.msra.mxu3 %v2246_v57 }
  0x67   : > { %805 = vmatpush.bf16.msra.mxu0 %v2245_v58  ;;  %1064 = vmatpush.bf16.msra.mxu1 %v2245_v58 }
  0x68   : > { %1347 = vmatpush.bf16.msra.mxu2 %v2245_v58  ;;  %1604 = vmatpush.bf16.msra.mxu3 %v2245_v58 }
  0x6b   : > { %806 = vmatpush.bf16.msra.mxu0 %v2244_v59  ;;  %1065 = vmatpush.bf16.msra.mxu1 %v2244_v59 }
  0x6c   : > { %1348 = vmatpush.bf16.msra.mxu2 %v2244_v59  ;;  %1605 = vmatpush.bf16.msra.mxu3 %v2244_v59 }
  0x6e   : > { %807 = vmatmul.bf16.vlgmr.msra.gmra.mxu0 %v2252_v60  ;;  %1066 = vmatmul.bf16.vlgmr.msra.gmra.mxu1 %v2265_v61  ;;  %v2261_v61 = vld [vmem:[%s2620_s24 + $0x48] sm:$0xff] }
  0x6f   : > { %1349 = vmatmul.bf16.vlgmr.msra.gmra.mxu2 %v2278_v62  ;;  %1606 = vmatmul.bf16.vlgmr.msra.gmra.mxu3 %v2291_v63  ;;  %v2274_v62 = vld [vmem:[%s2620_s24 + $0xb0] sm:$0xff] }
  0x7e   : > { %812 = vmatmul.bf16.gmra.mxu0 %v2253_v0  ;;  %1071 = vmatmul.bf16.gmra.mxu1 %v2266_v1 }
  0x7f   : > { %1354 = vmatmul.bf16.gmra.mxu2 %v2279_v2  ;;  %1611 = vmatmul.bf16.gmra.mxu3 %v2292_v3 }
  0x8e   : > { %817 = vmatmul.bf16.gmra.mxu0 %v2254_v4  ;;  %1076 = vmatmul.bf16.gmra.mxu1 %v2267_v5  ;;  %v2287_v4 = vld [vmem:[%s2620_s24 + $0x118] sm:$0xff]  ;;  %v2300_v5 = vld [vmem:[%s2620_s24 + $0x180] sm:$0xff] }
  0x8f   : > { %1359 = vmatmul.bf16.gmra.mxu2 %v2280_v6  ;;  %1616 = vmatmul.bf16.gmra.mxu3 %v2293_v7 }
  0x9e   : > { %822 = vmatmul.bf16.gmra.mxu0 %v2255_v8  ;;  %1081 = vmatmul.bf16.gmra.mxu1 %v2268_v9 }
  0x9f   : > { %1364 = vmatmul.bf16.gmra.mxu2 %v2281_v10  ;;  %1621 = vmatmul.bf16.gmra.mxu3 %v2294_v11 }
  0xae   : > { %827 = vmatmul.bf16.gmra.mxu0 %v2256_v12  ;;  %1086 = vmatmul.bf16.gmra.mxu1 %v2269_v13 }
  0xaf   : > { %1369 = vmatmul.bf16.gmra.mxu2 %v2282_v14  ;;  %1626 = vmatmul.bf16.gmra.mxu3 %v2295_v15 }
  0xbe   : > { %832 = vmatmul.bf16.gmra.mxu0 %v2257_v16  ;;  %1091 = vmatmul.bf16.gmra.mxu1 %v2270_v17 }
  0xbf   : > { %1374 = vmatmul.bf16.gmra.mxu2 %v2283_v18  ;;  %1631 = vmatmul.bf16.gmra.mxu3 %v2296_v19 }
  0xce   : > { %837 = vmatmul.bf16.gmra.mxu0 %v2258_v20  ;;  %1096 = vmatmul.bf16.gmra.mxu1 %v2271_v21 }
  0xcf   : > { %1379 = vmatmul.bf16.gmra.mxu2 %v2284_v22  ;;  %1636 = vmatmul.bf16.gmra.mxu3 %v2297_v23 }
  0xde   : > { %842 = vmatmul.bf16.gmra.mxu0 %v2259_v24  ;;  %1101 = vmatmul.bf16.gmra.mxu1 %v2272_v25 }
  0xdf   : > { %1384 = vmatmul.bf16.gmra.mxu2 %v2285_v26  ;;  %1641 = vmatmul.bf16.gmra.mxu3 %v2298_v27 }
  0xeb   : > { %v808_v31 = vpop.f32.mrf.mxu0  ;;  %v1067_v32 = vpop.f32.mrf.mxu1 }
  0xec   : > { %v809_v36 = vadd.f32 %v808_v31, %v2661_v35  ;;  %v1068_v37 = vadd.f32 %v1067_v32, %v2661_v35 }
  0xee   : > { %847 = vmatmul.bf16.gmra.mxu0 %v2260_v29  ;;  %1106 = vmatmul.bf16.gmra.mxu1 %v2273_v30  ;;  %v873_v45 = vmax.f32 %v809_v36, 0.0  ;;  %v1132_v46 = vmax.f32 %v1068_v37, 0.0 }
  0xef   : > { %1389 = vmatmul.bf16.gmra.mxu2 %v2286_v33  ;;  %1646 = vmatmul.bf16.gmra.mxu3 %v2299_v34 }
  0xf0   : > { %v900_v53 = vmul.f32 %v2665_v40, %v873_v45  ;;  %v1158_v55 = vmul.f32 %v1132_v46, %v2665_v40 }
  0xf2   : > { %v1350_v38 = vpop.f32.mrf.mxu2  ;;  %v1607_v39 = vpop.f32.mrf.mxu3  ;;  %v927_v6 = vadd.f32 %v2676_v54, %v900_v53  ;;  %v1184_v7 = vadd.f32 %v1158_v55, %v2676_v54 }
  0xf3   : > { %v1351_v41 = vadd.f32 %v1350_v38, %v2661_v35  ;;  %v1608_v42 = vadd.f32 %v1607_v39, %v2661_v35  ;;  %v810_v43 = vpop.f32.mrf.mxu0  ;;  %v1069_v44 = vpop.f32.mrf.mxu1 }
  0xf4   : > { %v811_v47 = vadd.f32 %v810_v43, %v2661_v35  ;;  %v1070_v48 = vadd.f32 %v1069_v44, %v2661_v35  ;;  %v1210_v18 = vmax.f32 %v927_v6, %v1184_v7 }
  0xf5   : > { %v1415_v49 = vmax.f32 %v1351_v41, 0.0  ;;  %v1672_v50 = vmax.f32 %v1608_v42, 0.0 }
  0xf6   : > { %v874_v51 = vmax.f32 %v811_v47, 0.0  ;;  %v1133_v52 = vmax.f32 %v1070_v48, 0.0 }
  0xf7   : > { %v1441_v56 = vmul.f32 %v1415_v49, %v2665_v40  ;;  %v1698_v57 = vmul.f32 %v1672_v50, %v2665_v40  ;;  %v2262_v50 = vld [vmem:[%s2620_s24 + $0x50] sm:$0xff] }
  0xf8   : > { %v901_v58 = vmul.f32 %v2665_v40, %v874_v51  ;;  %v1159_v63 = vmul.f32 %v1133_v52, %v2665_v40  ;;  %v2275_v51 = vld [vmem:[%s2620_s24 + $0xb8] sm:$0xff] }
  0xf9   : > { %v1467_v8 = vadd.f32 %v1441_v56, %v2676_v54  ;;  %v1724_v9 = vadd.f32 %v1698_v57, %v2676_v54 }
  0xfa   : > { %v1352_v59 = vpop.f32.mrf.mxu2  ;;  %v1609_v60 = vpop.f32.mrf.mxu3  ;;  %v928_v12 = vadd.f32 %v2676_v54, %v901_v58  ;;  %v1185_v13 = vadd.f32 %v1159_v63, %v2676_v54  ;;  %v2288_v58 = vld [vmem:[%s2620_s24 + $0x120] sm:$0xff] }
  0xfb   : > { %v1353_v0 = vadd.f32 %v1352_v59, %v2661_v35  ;;  %v1610_v1 = vadd.f32 %v1609_v60, %v2661_v35  ;;  %v813_v2 = vpop.f32.mrf.mxu0  ;;  %v1072_v3 = vpop.f32.mrf.mxu1  ;;  %v1750_v19 = vmax.f32 %v1467_v8, %v1724_v9  ;;  %v2301_v59 = vld [vmem:[%s2620_s24 + $0x188] sm:$0xff] }
  0xfc   : > { %v814_v16 = vadd.f32 %v813_v2, %v2661_v35  ;;  %v1073_v17 = vadd.f32 %v1072_v3, %v2661_v35  ;;  %v1211_v24 = vmax.f32 %v928_v12, %v1185_v13 }
  0xfd   : > { %v1416_v10 = vmax.f32 %v1353_v0, 0.0  ;;  %v1673_v11 = vmax.f32 %v1610_v1, 0.0  ;;  %v1776_v34 = vmax.f32 %v1210_v18, %v1750_v19 }
  0xfe   : > { %852 = vmatmul.bf16.gmra.mxu0 %v2261_v61  ;;  %1111 = vmatmul.bf16.gmra.mxu1 %v2274_v62  ;;  %v875_v30 = vmax.f32 %v814_v16, 0.0  ;;  %v1134_v31 = vmax.f32 %v1073_v17, 0.0 }
  0xff   : > { %v1442_v14 = vmul.f32 %v1416_v10, %v2665_v40  ;;  %v1699_v15 = vmul.f32 %v1673_v11, %v2665_v40  ;;  %1394 = vmatmul.bf16.gmra.mxu2 %v2287_v4  ;;  %1651 = vmatmul.bf16.gmra.mxu3 %v2300_v5 }
 0x100   : > { %v902_v43 = vmul.f32 %v2665_v40, %v875_v30  ;;  %v1160_v44 = vmul.f32 %v1134_v31, %v2665_v40 }
 0x101   : > { %v1468_v20 = vadd.f32 %v1442_v14, %v2676_v54  ;;  %v1725_v21 = vadd.f32 %v1699_v15, %v2676_v54 }
 0x102   : > { %v1355_v22 = vpop.f32.mrf.mxu2  ;;  %v1612_v23 = vpop.f32.mrf.mxu3  ;;  %v929_v60 = vadd.f32 %v2676_v54, %v902_v43  ;;  %v1186_v61 = vadd.f32 %v1160_v44, %v2676_v54 }
 0x103   : > { %v1751_v25 = vmax.f32 %v1468_v20, %v1725_v21  ;;  %v1356_v26 = vadd.f32 %v1355_v22, %v2661_v35  ;;  %v1613_v27 = vadd.f32 %v1612_v23, %v2661_v35  ;;  %v815_v28 = vpop.f32.mrf.mxu0  ;;  %v1074_v29 = vpop.f32.mrf.mxu1 }
 0x104   : > { %v816_v32 = vadd.f32 %v815_v28, %v2661_v35  ;;  %v1075_v33 = vadd.f32 %v1074_v29, %v2661_v35  ;;  %v1212_v8 = vmax.f32 %v929_v60, %v1186_v61 }
 0x105   : > { %v1777_v36 = vmax.f32 %v1211_v24, %v1751_v25  ;;  %v1417_v37 = vmax.f32 %v1356_v26, 0.0  ;;  %v1674_v38 = vmax.f32 %v1613_v27, 0.0 }
 0x106   : > { %v876_v39 = vmax.f32 %v816_v32, 0.0  ;;  %v1135_v42 = vmax.f32 %v1075_v33, 0.0 }
 0x107   : > { %v2307_v41 = vpack.c.bf16 %v1777_v36, %v1776_v34  ;;  %v1443_v45 = vmul.f32 %v1417_v37, %v2665_v40  ;;  %v1700_v46 = vmul.f32 %v1674_v38, %v2665_v40 }
 0x108   : > { %v903_v47 = vmul.f32 %v2665_v40, %v876_v39  ;;  %v1161_v52 = vmul.f32 %v1135_v42, %v2665_v40  ;;  %v2263_v39 = vld [vmem:[%s2620_s24 + $0x58] sm:$0xff] }
 0x109   : > { %2308 = vst [vmem:[%s2712_s28] sm:$0xff] %v2307_v41   ;;  %v1469_v62 = vadd.f32 %v1443_v45, %v2676_v54  ;;  %v1726_v63 = vadd.f32 %v1700_v46, %v2676_v54  ;;  %v2276_v41 = vld [vmem:[%s2620_s24 + $0xc0] sm:$0xff] }
 0x10a   : > { %v1357_v48 = vpop.f32.mrf.mxu2  ;;  %v1614_v49 = vpop.f32.mrf.mxu3  ;;  %v930_v2 = vadd.f32 %v2676_v54, %v903_v47  ;;  %v1187_v3 = vadd.f32 %v1161_v52, %v2676_v54  ;;  %v2289_v47 = vld [vmem:[%s2620_s24 + $0x128] sm:$0xff] }
 0x10b   : > { %v1358_v53 = vadd.f32 %v1357_v48, %v2661_v35  ;;  %v1615_v55 = vadd.f32 %v1614_v49, %v2661_v35  ;;  %v818_v56 = vpop.f32.mrf.mxu0  ;;  %v1077_v57 = vpop.f32.mrf.mxu1  ;;  %v1752_v9 = vmax.f32 %v1469_v62, %v1726_v63  ;;  %v2302_v48 = vld [vmem:[%s2620_s24 + $0x190] sm:$0xff] }
 0x10c   : > { %v819_v6 = vadd.f32 %v818_v56, %v2661_v35  ;;  %v1078_v7 = vadd.f32 %v1077_v57, %v2661_v35  ;;  %v1213_v14 = vmax.f32 %v930_v2, %v1187_v3 }
 0x10d   : > { %v1418_v0 = vmax.f32 %v1358_v53, 0.0  ;;  %v1675_v1 = vmax.f32 %v1615_v55, 0.0  ;;  %v1778_v24 = vmax.f32 %v1212_v8, %v1752_v9 }
 0x10e   : > { %857 = vmatmul.bf16.gmra.mxu0 %v2262_v50  ;;  %1116 = vmatmul.bf16.gmra.mxu1 %v2275_v51  ;;  %v877_v20 = vmax.f32 %v819_v6, 0.0  ;;  %v1136_v21 = vmax.f32 %v1078_v7, 0.0 }
 0x10f   : > { %v1444_v4 = vmul.f32 %v1418_v0, %v2665_v40  ;;  %v1701_v5 = vmul.f32 %v1675_v1, %v2665_v40  ;;  %1399 = vmatmul.bf16.gmra.mxu2 %v2288_v58  ;;  %1656 = vmatmul.bf16.gmra.mxu3 %v2301_v59 }
 0x110   : > { %v904_v31 = vmul.f32 %v2665_v40, %v877_v20  ;;  %v1162_v32 = vmul.f32 %v1136_v21, %v2665_v40 }
 0x111   : > { %v1470_v10 = vadd.f32 %v1444_v4, %v2676_v54  ;;  %v1727_v11 = vadd.f32 %v1701_v5, %v2676_v54 }
 0x112   : > { %v1360_v12 = vpop.f32.mrf.mxu2  ;;  %v1617_v13 = vpop.f32.mrf.mxu3  ;;  %v931_v49 = vadd.f32 %v2676_v54, %v904_v31  ;;  %v1188_v50 = vadd.f32 %v1162_v32, %v2676_v54 }
 0x113   : > { %v1753_v15 = vmax.f32 %v1470_v10, %v1727_v11  ;;  %v1361_v16 = vadd.f32 %v1360_v12, %v2661_v35  ;;  %v1618_v17 = vadd.f32 %v1617_v13, %v2661_v35  ;;  %v820_v18 = vpop.f32.mrf.mxu0  ;;  %v1079_v19 = vpop.f32.mrf.mxu1 }
 0x114   : > { %v821_v22 = vadd.f32 %v820_v18, %v2661_v35  ;;  %v1080_v23 = vadd.f32 %v1079_v19, %v2661_v35  ;;  %v1214_v62 = vmax.f32 %v931_v49, %v1188_v50 }
 0x115   : > { %v1779_v25 = vmax.f32 %v1213_v14, %v1753_v15  ;;  %v1419_v26 = vmax.f32 %v1361_v16, 0.0  ;;  %v1676_v27 = vmax.f32 %v1618_v17, 0.0 }
 0x116   : > { %v878_v28 = vmax.f32 %v821_v22, 0.0  ;;  %v1137_v30 = vmax.f32 %v1080_v23, 0.0 }
 0x117   : > { %v2312_v29 = vpack.c.bf16 %v1779_v25, %v1778_v24  ;;  %v1445_v33 = vmul.f32 %v1419_v26, %v2665_v40  ;;  %v1702_v34 = vmul.f32 %v1676_v27, %v2665_v40 }
 0x118   : > { %v905_v36 = vmul.f32 %v2665_v40, %v878_v28  ;;  %v1163_v42 = vmul.f32 %v1137_v30, %v2665_v40  ;;  %v2264_v28 = vld [vmem:[%s2620_s24 + $0x60] sm:$0xff] }
 0x119   : > { %2369 = vst [vmem:[%s2712_s28 + $0x8] sm:$0xff] %v2312_v29   ;;  %v1471_v51 = vadd.f32 %v1445_v33, %v2676_v54  ;;  %v1728_v52 = vadd.f32 %v1702_v34, %v2676_v54  ;;  %v2277_v29 = vld [vmem:[%s2620_s24 + $0xc8] sm:$0xff] }
 0x11a   : > { %v1362_v37 = vpop.f32.mrf.mxu2  ;;  %v1619_v38 = vpop.f32.mrf.mxu3  ;;  %v932_v56 = vadd.f32 %v2676_v54, %v905_v36  ;;  %v1189_v57 = vadd.f32 %v1163_v42, %v2676_v54  ;;  %v2290_v36 = vld [vmem:[%s2620_s24 + $0x130] sm:$0xff] }
 0x11b   : > { %v1363_v43 = vadd.f32 %v1362_v37, %v2661_v35  ;;  %v1620_v44 = vadd.f32 %v1619_v38, %v2661_v35  ;;  %v823_v45 = vpop.f32.mrf.mxu0  ;;  %v1082_v46 = vpop.f32.mrf.mxu1  ;;  %v1754_v63 = vmax.f32 %v1471_v51, %v1728_v52  ;;  %v2303_v37 = vld [vmem:[%s2620_s24 + $0x198] sm:$0xff] }
 0x11c   : > { %v824_v60 = vadd.f32 %v823_v45, %v2661_v35  ;;  %v1083_v61 = vadd.f32 %v1082_v46, %v2661_v35  ;;  %v1215_v4 = vmax.f32 %v932_v56, %v1189_v57 }
 0x11d   : > { %v1420_v53 = vmax.f32 %v1363_v43, 0.0  ;;  %v1677_v55 = vmax.f32 %v1620_v44, 0.0  ;;  %v1780_v14 = vmax.f32 %v1214_v62, %v1754_v63 }
 0x11e   : > { %862 = vmatmul.bf16.gmra.mxu0 %v2263_v39  ;;  %1121 = vmatmul.bf16.gmra.mxu1 %v2276_v41  ;;  %v879_v10 = vmax.f32 %v824_v60, 0.0  ;;  %v1138_v11 = vmax.f32 %v1083_v61, 0.0 }
 0x11f   : > { %v1446_v58 = vmul.f32 %v1420_v53, %v2665_v40  ;;  %v1703_v59 = vmul.f32 %v1677_v55, %v2665_v40  ;;  %1404 = vmatmul.bf16.gmra.mxu2 %v2289_v47  ;;  %1661 = vmatmul.bf16.gmra.mxu3 %v2302_v48 }
 0x120   : > { %v906_v21 = vmul.f32 %v2665_v40, %v879_v10  ;;  %v1164_v22 = vmul.f32 %v1138_v11, %v2665_v40 }
 0x121   : > { %v1472_v0 = vadd.f32 %v1446_v58, %v2676_v54  ;;  %v1729_v1 = vadd.f32 %v1703_v59, %v2676_v54 }
 0x122   : > { %v1365_v2 = vpop.f32.mrf.mxu2  ;;  %v1622_v3 = vpop.f32.mrf.mxu3  ;;  %v933_v38 = vadd.f32 %v2676_v54, %v906_v21  ;;  %v1190_v39 = vadd.f32 %v1164_v22, %v2676_v54 }
 0x123   : > { %v1755_v5 = vmax.f32 %v1472_v0, %v1729_v1  ;;  %v1366_v6 = vadd.f32 %v1365_v2, %v2661_v35  ;;  %v1623_v7 = vadd.f32 %v1622_v3, %v2661_v35  ;;  %v825_v8 = vpop.f32.mrf.mxu0  ;;  %v1084_v9 = vpop.f32.mrf.mxu1 }
 0x124   : > { %v826_v12 = vadd.f32 %v825_v8, %v2661_v35  ;;  %v1085_v13 = vadd.f32 %v1084_v9, %v2661_v35  ;;  %v1216_v51 = vmax.f32 %v933_v38, %v1190_v39 }
 0x125   : > { %v1781_v15 = vmax.f32 %v1215_v4, %v1755_v5  ;;  %v1421_v16 = vmax.f32 %v1366_v6, 0.0  ;;  %v1678_v17 = vmax.f32 %v1623_v7, 0.0 }
 0x126   : > { %v880_v18 = vmax.f32 %v826_v12, 0.0  ;;  %v1139_v20 = vmax.f32 %v1085_v13, 0.0 }
 0x127   : > { %v2317_v19 = vpack.c.bf16 %v1781_v15, %v1780_v14  ;;  %v1447_v23 = vmul.f32 %v1421_v16, %v2665_v40  ;;  %v1704_v24 = vmul.f32 %v1678_v17, %v2665_v40 }
 0x128   : > { %v907_v25 = vmul.f32 %v2665_v40, %v880_v18  ;;  %v1165_v30 = vmul.f32 %v1139_v20, %v2665_v40 }
 0x129   : > { %2370 = vst [vmem:[%s2712_s28 + $0x10] sm:$0xff] %v2317_v19   ;;  %v1473_v41 = vadd.f32 %v1447_v23, %v2676_v54  ;;  %v1730_v42 = vadd.f32 %v1704_v24, %v2676_v54 }
 0x12a   : > { %v1367_v26 = vpop.f32.mrf.mxu2  ;;  %v1624_v27 = vpop.f32.mrf.mxu3  ;;  %v934_v45 = vadd.f32 %v2676_v54, %v907_v25  ;;  %v1191_v46 = vadd.f32 %v1165_v30, %v2676_v54 }
 0x12b   : > { %v1368_v31 = vadd.f32 %v1367_v26, %v2661_v35  ;;  %v1625_v32 = vadd.f32 %v1624_v27, %v2661_v35  ;;  %v828_v33 = vpop.f32.mrf.mxu0  ;;  %v1087_v34 = vpop.f32.mrf.mxu1  ;;  %v1756_v52 = vmax.f32 %v1473_v41, %v1730_v42 }
 0x12c   : > { %v829_v49 = vadd.f32 %v828_v33, %v2661_v35  ;;  %v1088_v50 = vadd.f32 %v1087_v34, %v2661_v35  ;;  %v1217_v58 = vmax.f32 %v934_v45, %v1191_v46 }
 0x12d   : > { %v1422_v43 = vmax.f32 %v1368_v31, 0.0  ;;  %v1679_v44 = vmax.f32 %v1625_v32, 0.0  ;;  %v1782_v4 = vmax.f32 %v1216_v51, %v1756_v52 }
 0x12e   : > { %867 = vmatmul.bf16.gmra.mxu0 %v2264_v28  ;;  %1126 = vmatmul.bf16.gmra.mxu1 %v2277_v29  ;;  %v881_v0 = vmax.f32 %v829_v49, 0.0  ;;  %v1140_v1 = vmax.f32 %v1088_v50, 0.0 }
 0x12f   : > { %v1448_v47 = vmul.f32 %v1422_v43, %v2665_v40  ;;  %v1705_v48 = vmul.f32 %v1679_v44, %v2665_v40  ;;  %1409 = vmatmul.bf16.gmra.mxu2 %v2290_v36  ;;  %1666 = vmatmul.bf16.gmra.mxu3 %v2303_v37 }
 0x130   : > { %v908_v11 = vmul.f32 %v2665_v40, %v881_v0  ;;  %v1166_v12 = vmul.f32 %v1140_v1, %v2665_v40 }
 0x131   : > { %v1474_v53 = vadd.f32 %v1448_v47, %v2676_v54  ;;  %v1731_v55 = vadd.f32 %v1705_v48, %v2676_v54 }
 0x132   : > { %v1370_v56 = vpop.f32.mrf.mxu2  ;;  %v1627_v57 = vpop.f32.mrf.mxu3  ;;  %v935_v23 = vadd.f32 %v2676_v54, %v908_v11  ;;  %v1192_v24 = vadd.f32 %v1166_v12, %v2676_v54 }
 0x133   : > { %v1757_v59 = vmax.f32 %v1474_v53, %v1731_v55  ;;  %v1371_v60 = vadd.f32 %v1370_v56, %v2661_v35  ;;  %v1628_v61 = vadd.f32 %v1627_v57, %v2661_v35  ;;  %v830_v62 = vpop.f32.mrf.mxu0  ;;  %v1089_v63 = vpop.f32.mrf.mxu1 }
 0x134   : > { %v831_v2 = vadd.f32 %v830_v62, %v2661_v35  ;;  %v1090_v3 = vadd.f32 %v1089_v63, %v2661_v35  ;;  %v1218_v36 = vmax.f32 %v935_v23, %v1192_v24 }
 0x135   : > { %v1783_v5 = vmax.f32 %v1217_v58, %v1757_v59  ;;  %v1423_v6 = vmax.f32 %v1371_v60, 0.0  ;;  %v1680_v7 = vmax.f32 %v1628_v61, 0.0 }
 0x136   : > { %v882_v9 = vmax.f32 %v831_v2, 0.0  ;;  %v1141_v10 = vmax.f32 %v1090_v3, 0.0 }
 0x137   : > { %v2322_v8 = vpack.c.bf16 %v1783_v5, %v1782_v4  ;;  %v1449_v13 = vmul.f32 %v1423_v6, %v2665_v40  ;;  %v1706_v14 = vmul.f32 %v1680_v7, %v2665_v40 }
 0x138   : > { %v909_v17 = vmul.f32 %v2665_v40, %v882_v9  ;;  %v1167_v18 = vmul.f32 %v1141_v10, %v2665_v40 }
 0x139   : > { %2371 = vst [vmem:[%s2712_s28 + $0x18] sm:$0xff] %v2322_v8   ;;  %v1475_v25 = vadd.f32 %v1449_v13, %v2676_v54  ;;  %v1732_v26 = vadd.f32 %v1706_v14, %v2676_v54 }
 0x13a   : > { %v1372_v15 = vpop.f32.mrf.mxu2  ;;  %v1629_v16 = vpop.f32.mrf.mxu3  ;;  %v936_v29 = vadd.f32 %v2676_v54, %v909_v17  ;;  %v1193_v30 = vadd.f32 %v1167_v18, %v2676_v54 }
 0x13b   : > { %v1373_v19 = vadd.f32 %v1372_v15, %v2661_v35  ;;  %v1630_v20 = vadd.f32 %v1629_v16, %v2661_v35  ;;  %v833_v21 = vpop.f32.mrf.mxu0  ;;  %v1092_v22 = vpop.f32.mrf.mxu1  ;;  %v1758_v37 = vmax.f32 %v1475_v25, %v1732_v26 }
 0x13c   : > { %v834_v33 = vadd.f32 %v833_v21, %v2661_v35  ;;  %v1093_v34 = vadd.f32 %v1092_v22, %v2661_v35  ;;  %v1219_v43 = vmax.f32 %v936_v29, %v1193_v30 }
 0x13d   : > { %v1424_v27 = vmax.f32 %v1373_v19, 0.0  ;;  %v1681_v28 = vmax.f32 %v1630_v20, 0.0  ;;  %v1784_v53 = vmax.f32 %v1218_v36, %v1758_v37 }
 0x13e   : > { %v883_v49 = vmax.f32 %v834_v33, 0.0  ;;  %v1142_v50 = vmax.f32 %v1093_v34, 0.0 }
 0x13f   : > { %v1450_v31 = vmul.f32 %v1424_v27, %v2665_v40  ;;  %v1707_v32 = vmul.f32 %v1681_v28, %v2665_v40 }
 0x140   : > { %v910_v61 = vmul.f32 %v2665_v40, %v883_v49  ;;  %v1168_v62 = vmul.f32 %v1142_v50, %v2665_v40 }
 0x141   : > { %v1476_v38 = vadd.f32 %v1450_v31, %v2676_v54  ;;  %v1733_v39 = vadd.f32 %v1707_v32, %v2676_v54 }
 0x142   : > { %v1375_v41 = vpop.f32.mrf.mxu2  ;;  %v1632_v42 = vpop.f32.mrf.mxu3  ;;  %v937_v9 = vadd.f32 %v2676_v54, %v910_v61  ;;  %v1194_v10 = vadd.f32 %v1168_v62, %v2676_v54 }
 0x143   : > { %v1759_v44 = vmax.f32 %v1476_v38, %v1733_v39  ;;  %v1376_v45 = vadd.f32 %v1375_v41, %v2661_v35  ;;  %v1633_v46 = vadd.f32 %v1632_v42, %v2661_v35  ;;  %v835_v47 = vpop.f32.mrf.mxu0  ;;  %v1094_v48 = vpop.f32.mrf.mxu1 }
 0x144   : > { %v836_v51 = vadd.f32 %v835_v47, %v2661_v35  ;;  %v1095_v52 = vadd.f32 %v1094_v48, %v2661_v35  ;;  %v1220_v21 = vmax.f32 %v937_v9, %v1194_v10 }
 0x145   : > { %v1785_v55 = vmax.f32 %v1219_v43, %v1759_v44  ;;  %v1425_v56 = vmax.f32 %v1376_v45, 0.0  ;;  %v1682_v57 = vmax.f32 %v1633_v46, 0.0 }
 0x146   : > { %v884_v59 = vmax.f32 %v836_v51, 0.0  ;;  %v1143_v60 = vmax.f32 %v1095_v52, 0.0 }
 0x147   : > { %v2327_v58 = vpack.c.bf16 %v1785_v55, %v1784_v53  ;;  %v1451_v63 = vmul.f32 %v1425_v56, %v2665_v40  ;;  %v1708_v0 = vmul.f32 %v1682_v57, %v2665_v40 }
 0x148   : > { %v911_v3 = vmul.f32 %v2665_v40, %v884_v59  ;;  %v1169_v4 = vmul.f32 %v1143_v60, %v2665_v40 }
 0x149   : > { %2372 = vst [vmem:[%s2712_s28 + $0x20] sm:$0xff] %v2327_v58   ;;  %v1477_v11 = vadd.f32 %v1451_v63, %v2676_v54  ;;  %v1734_v12 = vadd.f32 %v1708_v0, %v2676_v54 }
 0x14a   : > { %v1377_v1 = vpop.f32.mrf.mxu2  ;;  %v1634_v2 = vpop.f32.mrf.mxu3  ;;  %v938_v15 = vadd.f32 %v2676_v54, %v911_v3  ;;  %v1195_v16 = vadd.f32 %v1169_v4, %v2676_v54 }
 0x14b   : > { %v1378_v5 = vadd.f32 %v1377_v1, %v2661_v35  ;;  %v1635_v6 = vadd.f32 %v1634_v2, %v2661_v35  ;;  %v838_v7 = vpop.f32.mrf.mxu0  ;;  %v1097_v8 = vpop.f32.mrf.mxu1  ;;  %v1760_v22 = vmax.f32 %v1477_v11, %v1734_v12 }
 0x14c   : > { %v839_v19 = vadd.f32 %v838_v7, %v2661_v35  ;;  %v1098_v20 = vadd.f32 %v1097_v8, %v2661_v35  ;;  %v1221_v27 = vmax.f32 %v938_v15, %v1195_v16 }
 0x14d   : > { %v1426_v13 = vmax.f32 %v1378_v5, 0.0  ;;  %v1683_v14 = vmax.f32 %v1635_v6, 0.0  ;;  %v1786_v38 = vmax.f32 %v1220_v21, %v1760_v22 }
 0x14e   : > { %v885_v33 = vmax.f32 %v839_v19, 0.0  ;;  %v1144_v34 = vmax.f32 %v1098_v20, 0.0 }
 0x14f   : > { %v1452_v17 = vmul.f32 %v1426_v13, %v2665_v40  ;;  %v1709_v18 = vmul.f32 %v1683_v14, %v2665_v40 }
 0x150   : > { %v912_v46 = vmul.f32 %v2665_v40, %v885_v33  ;;  %v1170_v47 = vmul.f32 %v1144_v34, %v2665_v40 }
 0x151   : > { %v1478_v23 = vadd.f32 %v1452_v17, %v2676_v54  ;;  %v1735_v24 = vadd.f32 %v1709_v18, %v2676_v54 }
 0x152   : > { %v1380_v25 = vpop.f32.mrf.mxu2  ;;  %v1637_v26 = vpop.f32.mrf.mxu3  ;;  %v939_v59 = vadd.f32 %v2676_v54, %v912_v46  ;;  %v1196_v60 = vadd.f32 %v1170_v47, %v2676_v54 }
 0x153   : > { %v1761_v28 = vmax.f32 %v1478_v23, %v1735_v24  ;;  %v1381_v29 = vadd.f32 %v1380_v25, %v2661_v35  ;;  %v1638_v30 = vadd.f32 %v1637_v26, %v2661_v35  ;;  %v840_v31 = vpop.f32.mrf.mxu0  ;;  %v1099_v32 = vpop.f32.mrf.mxu1 }
 0x154   : > { %v841_v36 = vadd.f32 %v840_v31, %v2661_v35  ;;  %v1100_v37 = vadd.f32 %v1099_v32, %v2661_v35  ;;  %v1222_v7 = vmax.f32 %v939_v59, %v1196_v60 }
 0x155   : > { %v1787_v39 = vmax.f32 %v1221_v27, %v1761_v28  ;;  %v1427_v41 = vmax.f32 %v1381_v29, 0.0  ;;  %v1684_v42 = vmax.f32 %v1638_v30, 0.0 }
 0x156   : > { %v886_v44 = vmax.f32 %v841_v36, 0.0  ;;  %v1145_v45 = vmax.f32 %v1100_v37, 0.0 }
 0x157   : > { %v2332_v43 = vpack.c.bf16 %v1787_v39, %v1786_v38  ;;  %v1453_v48 = vmul.f32 %v1427_v41, %v2665_v40  ;;  %v1710_v49 = vmul.f32 %v1684_v42, %v2665_v40 }
 0x158   : > { %v913_v52 = vmul.f32 %v2665_v40, %v886_v44  ;;  %v1171_v53 = vmul.f32 %v1145_v45, %v2665_v40 }
 0x159   : > { %2373 = vst [vmem:[%s2712_s28 + $0x28] sm:$0xff] %v2332_v43   ;;  %v1479_v61 = vadd.f32 %v1453_v48, %v2676_v54  ;;  %v1736_v62 = vadd.f32 %v1710_v49, %v2676_v54 }
 0x15a   : > { %v1382_v50 = vpop.f32.mrf.mxu2  ;;  %v1639_v51 = vpop.f32.mrf.mxu3  ;;  %v940_v1 = vadd.f32 %v2676_v54, %v913_v52  ;;  %v1197_v2 = vadd.f32 %v1171_v53, %v2676_v54 }
 0x15b   : > { %v1383_v55 = vadd.f32 %v1382_v50, %v2661_v35  ;;  %v1640_v56 = vadd.f32 %v1639_v51, %v2661_v35  ;;  %v843_v57 = vpop.f32.mrf.mxu0  ;;  %v1102_v58 = vpop.f32.mrf.mxu1  ;;  %v1762_v8 = vmax.f32 %v1479_v61, %v1736_v62 }
 0x15c   : > { %v844_v5 = vadd.f32 %v843_v57, %v2661_v35  ;;  %v1103_v6 = vadd.f32 %v1102_v58, %v2661_v35  ;;  %v1223_v13 = vmax.f32 %v940_v1, %v1197_v2 }
 0x15d   : > { %v1428_v63 = vmax.f32 %v1383_v55, 0.0  ;;  %v1685_v0 = vmax.f32 %v1640_v56, 0.0  ;;  %v1788_v23 = vmax.f32 %v1222_v7, %v1762_v8 }
 0x15e   : > { %v887_v19 = vmax.f32 %v844_v5, 0.0  ;;  %v1146_v20 = vmax.f32 %v1103_v6, 0.0 }
 0x15f   : > { %v1454_v3 = vmul.f32 %v1428_v63, %v2665_v40  ;;  %v1711_v4 = vmul.f32 %v1685_v0, %v2665_v40 }
 0x160   : > { %v914_v30 = vmul.f32 %v2665_v40, %v887_v19  ;;  %v1172_v31 = vmul.f32 %v1146_v20, %v2665_v40 }
 0x161   : > { %v1480_v9 = vadd.f32 %v1454_v3, %v2676_v54  ;;  %v1737_v10 = vadd.f32 %v1711_v4, %v2676_v54 }
 0x162   : > { %v1385_v11 = vpop.f32.mrf.mxu2  ;;  %v1642_v12 = vpop.f32.mrf.mxu3  ;;  %v941_v44 = vadd.f32 %v2676_v54, %v914_v30  ;;  %v1198_v45 = vadd.f32 %v1172_v31, %v2676_v54 }
 0x163   : > { %v1763_v14 = vmax.f32 %v1480_v9, %v1737_v10  ;;  %v1386_v15 = vadd.f32 %v1385_v11, %v2661_v35  ;;  %v1643_v16 = vadd.f32 %v1642_v12, %v2661_v35  ;;  %v845_v17 = vpop.f32.mrf.mxu0  ;;  %v1104_v18 = vpop.f32.mrf.mxu1 }
 0x164   : > { %v846_v21 = vadd.f32 %v845_v17, %v2661_v35  ;;  %v1105_v22 = vadd.f32 %v1104_v18, %v2661_v35  ;;  %v1224_v57 = vmax.f32 %v941_v44, %v1198_v45 }
 0x165   : > { %v1789_v24 = vmax.f32 %v1223_v13, %v1763_v14  ;;  %v1429_v25 = vmax.f32 %v1386_v15, 0.0  ;;  %v1686_v26 = vmax.f32 %v1643_v16, 0.0 }
 0x166   : > { %v888_v28 = vmax.f32 %v846_v21, 0.0  ;;  %v1147_v29 = vmax.f32 %v1105_v22, 0.0 }
 0x167   : > { %v2337_v27 = vpack.c.bf16 %v1789_v24, %v1788_v23  ;;  %v1455_v32 = vmul.f32 %v1429_v25, %v2665_v40  ;;  %v1712_v33 = vmul.f32 %v1686_v26, %v2665_v40 }
 0x168   : > { %v915_v37 = vmul.f32 %v2665_v40, %v888_v28  ;;  %v1173_v38 = vmul.f32 %v1147_v29, %v2665_v40 }
 0x169   : > { %2374 = vst [vmem:[%s2712_s28 + $0x30] sm:$0xff] %v2337_v27   ;;  %v1481_v46 = vadd.f32 %v1455_v32, %v2676_v54  ;;  %v1738_v47 = vadd.f32 %v1712_v33, %v2676_v54 }
 0x16a   : > { %v1387_v34 = vpop.f32.mrf.mxu2  ;;  %v1644_v36 = vpop.f32.mrf.mxu3  ;;  %v942_v50 = vadd.f32 %v2676_v54, %v915_v37  ;;  %v1199_v51 = vadd.f32 %v1173_v38, %v2676_v54 }
 0x16b   : > { %v1388_v39 = vadd.f32 %v1387_v34, %v2661_v35  ;;  %v1645_v41 = vadd.f32 %v1644_v36, %v2661_v35  ;;  %v848_v42 = vpop.f32.mrf.mxu0  ;;  %v1107_v43 = vpop.f32.mrf.mxu1  ;;  %v1764_v58 = vmax.f32 %v1481_v46, %v1738_v47 }
 0x16c   : > { %v849_v55 = vadd.f32 %v848_v42, %v2661_v35  ;;  %v1108_v56 = vadd.f32 %v1107_v43, %v2661_v35  ;;  %v1225_v63 = vmax.f32 %v942_v50, %v1199_v51 }
 0x16d   : > { %v1430_v48 = vmax.f32 %v1388_v39, 0.0  ;;  %v1687_v49 = vmax.f32 %v1645_v41, 0.0  ;;  %v1790_v9 = vmax.f32 %v1224_v57, %v1764_v58 }
 0x16e   : > { %v889_v5 = vmax.f32 %v849_v55, 0.0  ;;  %v1148_v6 = vmax.f32 %v1108_v56, 0.0 }
 0x16f   : > { %v1456_v52 = vmul.f32 %v1430_v48, %v2665_v40  ;;  %v1713_v53 = vmul.f32 %v1687_v49, %v2665_v40 }
 0x170   : > { %v916_v16 = vmul.f32 %v2665_v40, %v889_v5  ;;  %v1174_v17 = vmul.f32 %v1148_v6, %v2665_v40 }
 0x171   : > { %v1482_v59 = vadd.f32 %v1456_v52, %v2676_v54  ;;  %v1739_v60 = vadd.f32 %v1713_v53, %v2676_v54 }
 0x172   : > { %v1390_v61 = vpop.f32.mrf.mxu2  ;;  %v1647_v62 = vpop.f32.mrf.mxu3  ;;  %v943_v28 = vadd.f32 %v2676_v54, %v916_v16  ;;  %v1200_v29 = vadd.f32 %v1174_v17, %v2676_v54 }
 0x173   : > { %v1765_v0 = vmax.f32 %v1482_v59, %v1739_v60  ;;  %v1391_v1 = vadd.f32 %v1390_v61, %v2661_v35  ;;  %v1648_v2 = vadd.f32 %v1647_v62, %v2661_v35  ;;  %v850_v3 = vpop.f32.mrf.mxu0  ;;  %v1109_v4 = vpop.f32.mrf.mxu1 }
 0x174   : > { %v851_v7 = vadd.f32 %v850_v3, %v2661_v35  ;;  %v1110_v8 = vadd.f32 %v1109_v4, %v2661_v35  ;;  %v1226_v42 = vmax.f32 %v943_v28, %v1200_v29 }
 0x175   : > { %v1791_v10 = vmax.f32 %v1225_v63, %v1765_v0  ;;  %v1431_v11 = vmax.f32 %v1391_v1, 0.0  ;;  %v1688_v12 = vmax.f32 %v1648_v2, 0.0 }
 0x176   : > { %v890_v14 = vmax.f32 %v851_v7, 0.0  ;;  %v1149_v15 = vmax.f32 %v1110_v8, 0.0 }
 0x177   : > { %v2342_v13 = vpack.c.bf16 %v1791_v10, %v1790_v9  ;;  %v1457_v18 = vmul.f32 %v1431_v11, %v2665_v40  ;;  %v1714_v19 = vmul.f32 %v1688_v12, %v2665_v40 }
 0x178   : > { %v917_v22 = vmul.f32 %v2665_v40, %v890_v14  ;;  %v1175_v23 = vmul.f32 %v1149_v15, %v2665_v40 }
 0x179   : > { %2375 = vst [vmem:[%s2712_s28 + $0x38] sm:$0xff] %v2342_v13   ;;  %v1483_v30 = vadd.f32 %v1457_v18, %v2676_v54  ;;  %v1740_v31 = vadd.f32 %v1714_v19, %v2676_v54 }
 0x17a   : > { %v1392_v20 = vpop.f32.mrf.mxu2  ;;  %v1649_v21 = vpop.f32.mrf.mxu3  ;;  %v944_v34 = vadd.f32 %v2676_v54, %v917_v22  ;;  %v1201_v36 = vadd.f32 %v1175_v23, %v2676_v54 }
 0x17b   : > { %v1393_v24 = vadd.f32 %v1392_v20, %v2661_v35  ;;  %v1650_v25 = vadd.f32 %v1649_v21, %v2661_v35  ;;  %v853_v26 = vpop.f32.mrf.mxu0  ;;  %v1112_v27 = vpop.f32.mrf.mxu1  ;;  %v1766_v43 = vmax.f32 %v1483_v30, %v1740_v31 }
 0x17c   : > { %v854_v39 = vadd.f32 %v853_v26, %v2661_v35  ;;  %v1113_v41 = vadd.f32 %v1112_v27, %v2661_v35  ;;  %v1227_v48 = vmax.f32 %v944_v34, %v1201_v36 }
 0x17d   : > { %v1432_v32 = vmax.f32 %v1393_v24, 0.0  ;;  %v1689_v33 = vmax.f32 %v1650_v25, 0.0  ;;  %v1792_v59 = vmax.f32 %v1226_v42, %v1766_v43 }
 0x17e   : > { %v891_v55 = vmax.f32 %v854_v39, 0.0  ;;  %v1150_v56 = vmax.f32 %v1113_v41, 0.0 }
 0x17f   : > { %v1458_v37 = vmul.f32 %v1432_v32, %v2665_v40  ;;  %v1715_v38 = vmul.f32 %v1689_v33, %v2665_v40 }
 0x180   : > { %v918_v2 = vmul.f32 %v2665_v40, %v891_v55  ;;  %v1176_v3 = vmul.f32 %v1150_v56, %v2665_v40 }
 0x181   : > { %v1484_v44 = vadd.f32 %v1458_v37, %v2676_v54  ;;  %v1741_v45 = vadd.f32 %v1715_v38, %v2676_v54 }
 0x182   : > { %v1395_v46 = vpop.f32.mrf.mxu2  ;;  %v1652_v47 = vpop.f32.mrf.mxu3  ;;  %v945_v14 = vadd.f32 %v2676_v54, %v918_v2  ;;  %v1202_v15 = vadd.f32 %v1176_v3, %v2676_v54 }
 0x183   : > { %v1767_v49 = vmax.f32 %v1484_v44, %v1741_v45  ;;  %v1396_v50 = vadd.f32 %v1395_v46, %v2661_v35  ;;  %v1653_v51 = vadd.f32 %v1652_v47, %v2661_v35  ;;  %v855_v52 = vpop.f32.mrf.mxu0  ;;  %v1114_v53 = vpop.f32.mrf.mxu1 }
 0x184   : > { %v856_v57 = vadd.f32 %v855_v52, %v2661_v35  ;;  %v1115_v58 = vadd.f32 %v1114_v53, %v2661_v35  ;;  %v1228_v26 = vmax.f32 %v945_v14, %v1202_v15 }
 0x185   : > { %v1793_v60 = vmax.f32 %v1227_v48, %v1767_v49  ;;  %v1433_v61 = vmax.f32 %v1396_v50, 0.0  ;;  %v1690_v62 = vmax.f32 %v1653_v51, 0.0 }
 0x186   : > { %v892_v0 = vmax.f32 %v856_v57, 0.0  ;;  %v1151_v1 = vmax.f32 %v1115_v58, 0.0 }
 0x187   : > { %v2347_v63 = vpack.c.bf16 %v1793_v60, %v1792_v59  ;;  %v1459_v4 = vmul.f32 %v1433_v61, %v2665_v40  ;;  %v1716_v5 = vmul.f32 %v1690_v62, %v2665_v40 }
 0x188   : > { %v919_v8 = vmul.f32 %v2665_v40, %v892_v0  ;;  %v1177_v9 = vmul.f32 %v1151_v1, %v2665_v40 }
 0x189   : > { %2376 = vst [vmem:[%s2712_s28 + $0x40] sm:$0xff] %v2347_v63   ;;  %v1485_v16 = vadd.f32 %v1459_v4, %v2676_v54  ;;  %v1742_v17 = vadd.f32 %v1716_v5, %v2676_v54 }
 0x18a   : > { %v1397_v6 = vpop.f32.mrf.mxu2  ;;  %v1654_v7 = vpop.f32.mrf.mxu3  ;;  %v946_v20 = vadd.f32 %v2676_v54, %v919_v8  ;;  %v1203_v21 = vadd.f32 %v1177_v9, %v2676_v54 }
 0x18b   : > { %v1398_v10 = vadd.f32 %v1397_v6, %v2661_v35  ;;  %v1655_v11 = vadd.f32 %v1654_v7, %v2661_v35  ;;  %v858_v12 = vpop.f32.mrf.mxu0  ;;  %v1117_v13 = vpop.f32.mrf.mxu1  ;;  %v1768_v27 = vmax.f32 %v1485_v16, %v1742_v17 }
 0x18c   : > { %v859_v24 = vadd.f32 %v858_v12, %v2661_v35  ;;  %v1118_v25 = vadd.f32 %v1117_v13, %v2661_v35  ;;  %v1229_v32 = vmax.f32 %v946_v20, %v1203_v21 }
 0x18d   : > { %v1434_v18 = vmax.f32 %v1398_v10, 0.0  ;;  %v1691_v19 = vmax.f32 %v1655_v11, 0.0  ;;  %v1794_v44 = vmax.f32 %v1228_v26, %v1768_v27 }
 0x18e   : > { %v893_v39 = vmax.f32 %v859_v24, 0.0  ;;  %v1152_v41 = vmax.f32 %v1118_v25, 0.0 }
 0x18f   : > { %v1460_v22 = vmul.f32 %v1434_v18, %v2665_v40  ;;  %v1717_v23 = vmul.f32 %v1691_v19, %v2665_v40 }
 0x190   : > { %v920_v51 = vmul.f32 %v2665_v40, %v893_v39  ;;  %v1178_v52 = vmul.f32 %v1152_v41, %v2665_v40 }
 0x191   : > { %v1486_v28 = vadd.f32 %v1460_v22, %v2676_v54  ;;  %v1743_v29 = vadd.f32 %v1717_v23, %v2676_v54 }
 0x192   : > { %v1400_v30 = vpop.f32.mrf.mxu2  ;;  %v1657_v31 = vpop.f32.mrf.mxu3  ;;  %v947_v0 = vadd.f32 %v2676_v54, %v920_v51  ;;  %v1204_v1 = vadd.f32 %v1178_v52, %v2676_v54 }
 0x193   : > { %v1769_v33 = vmax.f32 %v1486_v28, %v1743_v29  ;;  %v1401_v34 = vadd.f32 %v1400_v30, %v2661_v35  ;;  %v1658_v36 = vadd.f32 %v1657_v31, %v2661_v35  ;;  %v860_v37 = vpop.f32.mrf.mxu0  ;;  %v1119_v38 = vpop.f32.mrf.mxu1 }
 0x194   : > { %v861_v42 = vadd.f32 %v860_v37, %v2661_v35  ;;  %v1120_v43 = vadd.f32 %v1119_v38, %v2661_v35  ;;  %v1230_v12 = vmax.f32 %v947_v0, %v1204_v1 }
 0x195   : > { %v1795_v45 = vmax.f32 %v1229_v32, %v1769_v33  ;;  %v1435_v46 = vmax.f32 %v1401_v34, 0.0  ;;  %v1692_v47 = vmax.f32 %v1658_v36, 0.0 }
 0x196   : > { %v894_v49 = vmax.f32 %v861_v42, 0.0  ;;  %v1153_v50 = vmax.f32 %v1120_v43, 0.0 }
 0x197   : > { %v2352_v48 = vpack.c.bf16 %v1795_v45, %v1794_v44  ;;  %v1461_v53 = vmul.f32 %v1435_v46, %v2665_v40  ;;  %v1718_v55 = vmul.f32 %v1692_v47, %v2665_v40 }
 0x198   : > { %v921_v58 = vmul.f32 %v2665_v40, %v894_v49  ;;  %v1179_v59 = vmul.f32 %v1153_v50, %v2665_v40 }
 0x199   : > { %2377 = vst [vmem:[%s2712_s28 + $0x48] sm:$0xff] %v2352_v48   ;;  %v1487_v2 = vadd.f32 %v1461_v53, %v2676_v54  ;;  %v1744_v3 = vadd.f32 %v1718_v55, %v2676_v54 }
 0x19a   : > { %v1402_v56 = vpop.f32.mrf.mxu2  ;;  %v1659_v57 = vpop.f32.mrf.mxu3  ;;  %v948_v6 = vadd.f32 %v2676_v54, %v921_v58  ;;  %v1205_v7 = vadd.f32 %v1179_v59, %v2676_v54 }
 0x19b   : > { %v1403_v60 = vadd.f32 %v1402_v56, %v2661_v35  ;;  %v1660_v61 = vadd.f32 %v1659_v57, %v2661_v35  ;;  %v863_v62 = vpop.f32.mrf.mxu0  ;;  %v1122_v63 = vpop.f32.mrf.mxu1  ;;  %v1770_v13 = vmax.f32 %v1487_v2, %v1744_v3 }
 0x19c   : > { %v864_v10 = vadd.f32 %v863_v62, %v2661_v35  ;;  %v1123_v11 = vadd.f32 %v1122_v63, %v2661_v35  ;;  %v1231_v18 = vmax.f32 %v948_v6, %v1205_v7 }
 0x19d   : > { %v1436_v4 = vmax.f32 %v1403_v60, 0.0  ;;  %v1693_v5 = vmax.f32 %v1660_v61, 0.0  ;;  %v1796_v28 = vmax.f32 %v1230_v12, %v1770_v13 }
 0x19e   : > { %v895_v24 = vmax.f32 %v864_v10, 0.0  ;;  %v1154_v25 = vmax.f32 %v1123_v11, 0.0 }
 0x19f   : > { %v1462_v8 = vmul.f32 %v1436_v4, %v2665_v40  ;;  %v1719_v9 = vmul.f32 %v1693_v5, %v2665_v40 }
 0x1a0   : > { %v922_v36 = vmul.f32 %v2665_v40, %v895_v24  ;;  %v1180_v37 = vmul.f32 %v1154_v25, %v2665_v40 }
 0x1a1   : > { %v1488_v14 = vadd.f32 %v1462_v8, %v2676_v54  ;;  %v1745_v15 = vadd.f32 %v1719_v9, %v2676_v54 }
 0x1a2   : > { %v1405_v16 = vpop.f32.mrf.mxu2  ;;  %v1662_v17 = vpop.f32.mrf.mxu3  ;;  %v949_v49 = vadd.f32 %v2676_v54, %v922_v36  ;;  %v1206_v50 = vadd.f32 %v1180_v37, %v2676_v54 }
 0x1a3   : > { %v1771_v19 = vmax.f32 %v1488_v14, %v1745_v15  ;;  %v1406_v20 = vadd.f32 %v1405_v16, %v2661_v35  ;;  %v1663_v21 = vadd.f32 %v1662_v17, %v2661_v35  ;;  %v865_v22 = vpop.f32.mrf.mxu0  ;;  %v1124_v23 = vpop.f32.mrf.mxu1 }
 0x1a4   : > { %v866_v26 = vadd.f32 %v865_v22, %v2661_v35  ;;  %v1125_v27 = vadd.f32 %v1124_v23, %v2661_v35  ;;  %v1232_v62 = vmax.f32 %v949_v49, %v1206_v50 }
 0x1a5   : > { %v1797_v29 = vmax.f32 %v1231_v18, %v1771_v19  ;;  %v1437_v30 = vmax.f32 %v1406_v20, 0.0  ;;  %v1694_v31 = vmax.f32 %v1663_v21, 0.0 }
 0x1a6   : > { %v896_v33 = vmax.f32 %v866_v26, 0.0  ;;  %v1155_v34 = vmax.f32 %v1125_v27, 0.0 }
 0x1a7   : > { %v2357_v32 = vpack.c.bf16 %v1797_v29, %v1796_v28  ;;  %v1463_v38 = vmul.f32 %v1437_v30, %v2665_v40  ;;  %v1720_v39 = vmul.f32 %v1694_v31, %v2665_v40 }
 0x1a8   : > { %v923_v43 = vmul.f32 %v2665_v40, %v896_v33  ;;  %v1181_v44 = vmul.f32 %v1155_v34, %v2665_v40 }
 0x1a9   : > { %2378 = vst [vmem:[%s2712_s28 + $0x50] sm:$0xff] %v2357_v32   ;;  %v1489_v51 = vadd.f32 %v1463_v38, %v2676_v54  ;;  %v1746_v52 = vadd.f32 %v1720_v39, %v2676_v54 }
 0x1aa   : > { %v1407_v41 = vpop.f32.mrf.mxu2  ;;  %v1664_v42 = vpop.f32.mrf.mxu3  ;;  %v950_v56 = vadd.f32 %v2676_v54, %v923_v43  ;;  %v1207_v57 = vadd.f32 %v1181_v44, %v2676_v54 }
 0x1ab   : > { %v1408_v45 = vadd.f32 %v1407_v41, %v2661_v35  ;;  %v1665_v46 = vadd.f32 %v1664_v42, %v2661_v35  ;;  %v868_v47 = vpop.f32.mrf.mxu0  ;;  %v1127_v48 = vpop.f32.mrf.mxu1  ;;  %v1772_v63 = vmax.f32 %v1489_v51, %v1746_v52 }
 0x1ac   : > { %v869_v60 = vadd.f32 %v868_v47, %v2661_v35  ;;  %v1128_v61 = vadd.f32 %v1127_v48, %v2661_v35  ;;  %v1233_v4 = vmax.f32 %v950_v56, %v1207_v57 }
 0x1ad   : > { %v1438_v53 = vmax.f32 %v1408_v45, 0.0  ;;  %v1695_v55 = vmax.f32 %v1665_v46, 0.0  ;;  %v1798_v14 = vmax.f32 %v1232_v62, %v1772_v63 }
 0x1ae   : > { %v897_v10 = vmax.f32 %v869_v60, 0.0  ;;  %v1156_v11 = vmax.f32 %v1128_v61, 0.0 }
 0x1af   : > { %v1464_v58 = vmul.f32 %v1438_v53, %v2665_v40  ;;  %v1721_v59 = vmul.f32 %v1695_v55, %v2665_v40 }
 0x1b0   : > { %v924_v21 = vmul.f32 %v2665_v40, %v897_v10  ;;  %v1182_v22 = vmul.f32 %v1156_v11, %v2665_v40 }
 0x1b1   : > { %v1490_v0 = vadd.f32 %v1464_v58, %v2676_v54  ;;  %v1747_v1 = vadd.f32 %v1721_v59, %v2676_v54 }
 0x1b2   : > { %v1410_v2 = vpop.f32.mrf.mxu2  ;;  %v1667_v3 = vpop.f32.mrf.mxu3  ;;  %v951_v31 = vadd.f32 %v2676_v54, %v924_v21  ;;  %v1208_v32 = vadd.f32 %v1182_v22, %v2676_v54 }
 0x1b3   : > { %v1773_v5 = vmax.f32 %v1490_v0, %v1747_v1  ;;  %v1411_v6 = vadd.f32 %v1410_v2, %v2661_v35  ;;  %v1668_v7 = vadd.f32 %v1667_v3, %v2661_v35  ;;  %v870_v8 = vpop.f32.mrf.mxu0  ;;  %v1129_v9 = vpop.f32.mrf.mxu1 }
 0x1b4   : > { %v871_v12 = vadd.f32 %v870_v8, %v2661_v35  ;;  %v1130_v13 = vadd.f32 %v1129_v9, %v2661_v35 }
 0x1b5   : > { %v1799_v15 = vmax.f32 %v1233_v4, %v1773_v5  ;;  %v1439_v16 = vmax.f32 %v1411_v6, 0.0  ;;  %v1696_v17 = vmax.f32 %v1668_v7, 0.0 }
 0x1b6   : > { %v898_v19 = vmax.f32 %v871_v12, 0.0  ;;  %v1157_v20 = vmax.f32 %v1130_v13, 0.0 }
 0x1b7   : > { %v2362_v18 = vpack.c.bf16 %v1799_v15, %v1798_v14  ;;  %v1465_v23 = vmul.f32 %v1439_v16, %v2665_v40  ;;  %v1722_v24 = vmul.f32 %v1696_v17, %v2665_v40 }
 0x1b8   : > { %v925_v27 = vmul.f32 %v2665_v40, %v898_v19  ;;  %v1183_v28 = vmul.f32 %v1157_v20, %v2665_v40 }
 0x1b9   : > { %2379 = vst [vmem:[%s2712_s28 + $0x58] sm:$0xff] %v2362_v18   ;;  %v1491_v33 = vadd.f32 %v1465_v23, %v2676_v54  ;;  %v1748_v34 = vadd.f32 %v1722_v24, %v2676_v54 }
 0x1ba   : > { %v1412_v25 = vpop.f32.mrf.mxu2  ;;  %v1669_v26 = vpop.f32.mrf.mxu3  ;;  %v952_v38 = vadd.f32 %v2676_v54, %v925_v27  ;;  %v1209_v39 = vadd.f32 %v1183_v28, %v2676_v54 }
 0x1bb   : > { %v1413_v29 = vadd.f32 %v1412_v25, %v2661_v35  ;;  %v1670_v30 = vadd.f32 %v1669_v26, %v2661_v35  ;;  %v1234_v35 = vmax.f32 %v951_v31, %v1208_v32  ;;  %v1774_v43 = vmax.f32 %v1491_v33, %v1748_v34 }
 0x1bc   : > { %v1235_v46 = vmax.f32 %v952_v38, %v1209_v39 }
 0x1bd   : > { %v1440_v36 = vmax.f32 %v1413_v29, 0.0  ;;  %v1697_v37 = vmax.f32 %v1670_v30, 0.0  ;;  %v1800_v48 = vmax.f32 %v1234_v35, %v1774_v43 }
 0x1bf   : > { %v1466_v41 = vmul.f32 %v1440_v36, %v2665_v40  ;;  %v1723_v42 = vmul.f32 %v1697_v37, %v2665_v40 }
 0x1c1   : > { %v1492_v44 = vadd.f32 %v1466_v41, %v2676_v54  ;;  %v1749_v45 = vadd.f32 %v1723_v42, %v2676_v54 }
 0x1c3   : > { %v1775_v47 = vmax.f32 %v1492_v44, %v1749_v45 }
 0x1c5   : > { %v1801_v49 = vmax.f32 %v1235_v46, %v1775_v47 }
 0x1c7   : > { %v2367_v50 = vpack.c.bf16 %v1801_v49, %v1800_v48 }
 0x1c9   : > { %2380 = vst [vmem:[%s2712_s28 + $0x60] sm:$0xff] %v2367_v50  }
 0x1ca PF: > { %p10_p9 = scmp.ge.s32.totalorder %s2468_s16, 4   ;;  %s3035_s12 = smov %s2425_s13 }
 0x1cb   : > { %s3036_s13 = smov %s2477_s19  ;;  %s3037_s14 = smov %s2468_s16 }
 0x1cc   :  { %12 = sbr.rel (!%p10_p9) target bundleno = 2 (0x2), region = 111 }

// kernel: lenet_forward.4
= control target key start
LH: loop header
LB: loop body
LE: loop exit
PB: predicated region body
PF: predicated region fallthrough
CT: control target
= control target key end

     0   :  { %s1050_s12 = smov 0   ;;  %s1052_s13 = smov 0   ;;  %s1378_s0 = inlined_call_operand.vmem [shape: bf16[4,64,256], index: 0, kind: input, shape index: {}]   ;;  %s1379_s1 = inlined_call_operand.vmem [shape: bf16[256,128], index: 1, kind: input, shape index: {}]   ;;  %s1380_s2 = inlined_call_operand.vmem [shape: f32[8,128], index: 2, kind: input, shape index: {}]   ;;  %s1381_s3 = inlined_call_operand.vmem [shape: bf16[64,128], index: 3, kind: output, shape index: {}]  }
   0x1   :  { %s1054_s14 = smov 0  }
   0x2 LB: > { %s783_s15 = sadd.s32 4294967295, %s1028_s14   ;;  %s1067_s16 = sadd.s32 1, %s1028_s14   ;;  %s1028_s14 = sphi %s1054_s14, %s1384_s14   ;;  %s1024_s13 = sphi %s1052_s13, %s1383_s13   ;;  %s1020_s12 = sphi %s1050_s12, %s1382_s12  }
   0x3   : > { %s17_s17 = ssub.s32 %s1028_s14, %s1067_s16  ;;  %s20_s18 = sadd.s32 1, %s1024_s13 }
   0x4   : > { %p18_p0 = scmp.eq.s32.totalorder %s17_s17, 0  ;;  %p27_p1 = scmp.ne.s32.totalorder %s1024_s13, %s1020_s12 }
   0x5   : > { %p28_p2 = scmp.eq.s32.totalorder %s1028_s14, 0  ;;  %p786_p4 = scmp.ge.s32.totalorder %s1028_s14, 2 }
   0x6   : > { %s1076_s19 = scalar_select %p18_p0, %s1024_s13, %s20_s18  }
   0x7   : > { %p29_p3 = por %p28_p2, %p27_p1  ;;  %127 = sbr.rel (%p786_p4) target bundleno = 32 (0x20), region = 24 }
   0xc   : > { %130 = sbr.rel (!%p29_p3) target bundleno = 32 (0x20), region = 28  ;;  %s132_s20 = sand.u32 (%p29_p3), 1, %s1024_s13  }
   0xd   : > { %s938_s21 = sshll.u32 (%p29_p3), %s1028_s14, 5  ;;  %s787_s22 = sshll.u32 (%p29_p3), %s132_s20, 7 }
   0xe   : > { %s1084_s25 = scalar_lea.vmem (%p29_p3), %s1378_s0, %s938_s21  ;;  %s134_s26 = scalar_lea.vmem (%p29_p3), [#allocation2], %s787_s22 }
   0xf   : > { %v197_v0 = vld [vmem:[%s1084_s25] sm:$0xff] (%p29_p3)  ;;  %v199_v1 = vld [vmem:[%s1084_s25 + $0x8] sm:$0xff] (%p29_p3)  ;;  %v201_v2 = vld [vmem:[%s1084_s25 + $0x10] sm:$0xff] (%p29_p3) }
  0x10   : > { %198 = vst [vmem:[%s134_s26] sm:$0xff] (%p29_p3), %v197_v0  ;;  %v203_v3 = vld [vmem:[%s1084_s25 + $0x18] sm:$0xff] (%p29_p3)  ;;  %v205_v4 = vld [vmem:[%s1084_s25 + $0x40] sm:$0xff] (%p29_p3)  ;;  %v207_v5 = vld [vmem:[%s1084_s25 + $0x48] sm:$0xff] (%p29_p3) }
  0x11   : > { %200 = vst [vmem:[%s134_s26 + $0x8] sm:$0xff] %v199_v1  ;;  %v209_v6 = vld [vmem:[%s1084_s25 + $0x50] sm:$0xff]  ;;  %v211_v7 = vld [vmem:[%s1084_s25 + $0x58] sm:$0xff]  ;;  %v213_v8 = vld [vmem:[%s1084_s25 + $0x80] sm:$0xff] }
  0x12   : > { %202 = vst [vmem:[%s134_s26 + $0x10] sm:$0xff] %v201_v2  ;;  %v215_v9 = vld [vmem:[%s1084_s25 + $0x88] sm:$0xff]  ;;  %v217_v10 = vld [vmem:[%s1084_s25 + $0x90] sm:$0xff]  ;;  %v219_v11 = vld [vmem:[%s1084_s25 + $0x98] sm:$0xff] }
  0x13   : > { %204 = vst [vmem:[%s134_s26 + $0x18] sm:$0xff] %v203_v3  ;;  %v221_v12 = vld [vmem:[%s1084_s25 + $0xc0] sm:$0xff]  ;;  %v223_v13 = vld [vmem:[%s1084_s25 + $0xc8] sm:$0xff]  ;;  %v225_v14 = vld [vmem:[%s1084_s25 + $0xd0] sm:$0xff] }
  0x14   : > { %206 = vst [vmem:[%s134_s26 + $0x20] sm:$0xff] %v205_v4  ;;  %v227_v15 = vld [vmem:[%s1084_s25 + $0xd8] sm:$0xff] }
  0x15   : > { %208 = vst [vmem:[%s134_s26 + $0x28] sm:$0xff] %v207_v5 }
  0x16   : > { %210 = vst [vmem:[%s134_s26 + $0x30] sm:$0xff] %v209_v6 }
  0x17   : > { %212 = vst [vmem:[%s134_s26 + $0x38] sm:$0xff] %v211_v7 }
  0x18   : > { %214 = vst [vmem:[%s134_s26 + $0x40] sm:$0xff] %v213_v8 }
  0x19   : > { %216 = vst [vmem:[%s134_s26 + $0x48] sm:$0xff] %v215_v9 }
  0x1a   : > { %218 = vst [vmem:[%s134_s26 + $0x50] sm:$0xff] %v217_v10 }
  0x1b   : > { %220 = vst [vmem:[%s134_s26 + $0x58] sm:$0xff] %v219_v11 }
  0x1c   : > { %222 = vst [vmem:[%s134_s26 + $0x60] sm:$0xff] %v221_v12 }
  0x1d   : > { %224 = vst [vmem:[%s134_s26 + $0x68] sm:$0xff] %v223_v13 }
  0x1e   : > { %226 = vst [vmem:[%s134_s26 + $0x70] sm:$0xff] %v225_v14 }
  0x1f   : > { %228 = vst [vmem:[%s134_s26 + $0x78] sm:$0xff] %v227_v15 }
  0x20 PF: > { %p791_p5 = scmp.ge.s32.totalorder %s1028_s14, 1  ;;  %p233_p6 = scmp.lt.s32.totalorder %s1028_s14, 3 }
  0x22   : > { %p234_p7 = pnand %p791_p5, %p233_p6 }
  0x23   : > { %s240_s26 = sand.u32 (!%p234_p7), 1, %s1020_s12   ;;  %s793_s21 = sshll.u32 (!%p234_p7), %s783_s15, 2 }
  0x24   : > { %237 = sbr.rel (%p234_p7) target bundleno = 278 (0x116), region = 66  ;;  %s792_s4 = sshll.u32 (!%p234_p7), %s240_s26, 7 }
  0x25   : > { %s1209_s17 = scalar_lea.vmem (!%p234_p7), [#allocation2], %s792_s4  ;;  %p265_p8 = scmp.lt.s32.totalorder (!%p234_p7), %s793_s21, 7 }
  0x29   : > { %v1107_v16 = vld [vmem:[%s1379_s1 + $0x38] sm:$0xff]  ;;  %v1119_v18 = vld [vmem:[%s1379_s1 + $0x30] sm:$0xff]  ;;  %v1133_v20 = vld [vmem:[%s1379_s1 + $0x28] sm:$0xff]  ;;  %s1386_s21 = smov (!%p265_p8, %s793_s21), 7 }
  0x2a   : > { %v1112_v17 = vld [vmem:[%s1379_s1 + $0x78] sm:$0xff]  ;;  %424 = vmatpush.bf16.msra.mxu0 %v1107_v16  ;;  %v1124_v19 = vld [vmem:[%s1379_s1 + $0x70] sm:$0xff]  ;;  %501 = vmatpush.bf16.msra.mxu2 %v1107_v16  ;;  %v1138_v21 = vld [vmem:[%s1379_s1 + $0x68] sm:$0xff]  ;;  %s794_s14 = sshll.u32 %s1386_s21, 2 }
  0x2b   : > { %443 = vmatpush.bf16.msra.mxu1 %v1112_v17  ;;  %520 = vmatpush.bf16.msra.mxu3 %v1112_v17  ;;  %v1147_v22 = vld [vmem:[%s1379_s1 + $0x20] sm:$0xff]  ;;  %v1161_v24 = vld [vmem:[%s1379_s1 + $0x18] sm:$0xff]  ;;  %v1176_v26 = vld [vmem:[%s1379_s1 + $0x10] sm:$0xff]  ;;  %s1347_s23 = scalar_lea.vmem %s1381_s3, %s794_s14 }
  0x2c   : > { %v1152_v23 = vld [vmem:[%s1379_s1 + $0x60] sm:$0xff]  ;;  %v1166_v25 = vld [vmem:[%s1379_s1 + $0x58] sm:$0xff]  ;;  %v1181_v27 = vld [vmem:[%s1379_s1 + $0x50] sm:$0xff] }
  0x2d   : > { %v1190_v28 = vld [vmem:[%s1379_s1 + $0x8] sm:$0xff]  ;;  %v1202_v30 = vld [vmem:[%s1379_s1] sm:$0xff]  ;;  %v805_v44 = vld [vmem:[%s1209_s17 + $0x10] sm:$0xf] }
  0x2e   : > { %425 = vmatpush.bf16.msra.mxu0 %v1119_v18  ;;  %502 = vmatpush.bf16.msra.mxu2 %v1119_v18  ;;  %v1195_v29 = vld [vmem:[%s1379_s1 + $0x48] sm:$0xff]  ;;  %v1207_v31 = vld [vmem:[%s1379_s1 + $0x40] sm:$0xff]  ;;  %v958_v45 = vld [vmem:[%s1209_s17 + $0x14] sm:$0xf0] }
  0x2f   : > { %444 = vmatpush.bf16.msra.mxu1 %v1124_v19  ;;  %521 = vmatpush.bf16.msra.mxu3 %v1124_v19  ;;  %v797_v32 = vld [vmem:[%s1209_s17] sm:$0xf]  ;;  %v956_v33 = vld [vmem:[%s1209_s17 + $0x4] sm:$0xf0]  ;;  %v955_v34 = vld [vmem:[%s1209_s17 + $0x4] sm:$0xf]  ;;  %v806_v52 = vor.u32 %v958_v45, %v805_v44 }
  0x30   : > { %v799_v35 = vld [vmem:[%s1209_s17 + $0x8] sm:$0xf0]  ;;  %v881_v36 = vld [vmem:[%s1209_s17 + $0x20] sm:$0xf]  ;;  %v960_v37 = vld [vmem:[%s1209_s17 + $0x24] sm:$0xf0]  ;;  %v798_v40 = vor.u32 %v956_v33, %v797_v32 }
  0x31   : > { %v959_v38 = vld [vmem:[%s1209_s17 + $0x24] sm:$0xf]  ;;  %v883_v39 = vld [vmem:[%s1209_s17 + $0x28] sm:$0xf0]  ;;  %v802_v41 = vor.u32 %v955_v34, %v799_v35  ;;  %v882_v42 = vor.u32 %v960_v37, %v881_v36  ;;  %v957_v46 = vld [vmem:[%s1209_s17 + $0x14] sm:$0xf] }
  0x32   : > { %426 = vmatpush.bf16.msra.mxu0 %v1133_v20  ;;  %503 = vmatpush.bf16.msra.mxu2 %v1133_v20  ;;  %v886_v43 = vor.u32 %v959_v38, %v883_v39  ;;  %v807_v47 = vld [vmem:[%s1209_s17 + $0x18] sm:$0xf0]  ;;  %v889_v48 = vld [vmem:[%s1209_s17 + $0x30] sm:$0xf]  ;;  %v962_v49 = vld [vmem:[%s1209_s17 + $0x34] sm:$0xf0] }
  0x33   : > { %445 = vmatpush.bf16.msra.mxu1 %v1138_v21  ;;  %522 = vmatpush.bf16.msra.mxu3 %v1138_v21  ;;  %v961_v50 = vld [vmem:[%s1209_s17 + $0x34] sm:$0xf]  ;;  %v891_v51 = vld [vmem:[%s1209_s17 + $0x38] sm:$0xf0]  ;;  %v810_v53 = vor.u32 %v957_v46, %v807_v47  ;;  %v890_v54 = vor.u32 %v962_v49, %v889_v48  ;;  %v901_v56 = vld [vmem:[%s1209_s17 + $0x40] sm:$0xf] }
  0x34   : > { %v894_v55 = vor.u32 %v961_v50, %v891_v51  ;;  %v964_v57 = vld [vmem:[%s1209_s17 + $0x44] sm:$0xf0]  ;;  %v963_v58 = vld [vmem:[%s1209_s17 + $0x44] sm:$0xf]  ;;  %v903_v59 = vld [vmem:[%s1209_s17 + $0x48] sm:$0xf0] }
  0x35   : > { %v921_v60 = vld [vmem:[%s1209_s17 + $0x60] sm:$0xf]  ;;  %v968_v61 = vld [vmem:[%s1209_s17 + $0x64] sm:$0xf0]  ;;  %v967_v62 = vld [vmem:[%s1209_s17 + $0x64] sm:$0xf]  ;;  %v902_v0 = vor.u32 %v964_v57, %v901_v56  ;;  %v906_v1 = vor.u32 %v963_v58, %v903_v59 }
  0x36   : > { %427 = vmatpush.bf16.msra.mxu0 %v1147_v22  ;;  %504 = vmatpush.bf16.msra.mxu2 %v1147_v22  ;;  %v923_v63 = vld [vmem:[%s1209_s17 + $0x68] sm:$0xf0]  ;;  %v922_v2 = vor.u32 %v968_v61, %v921_v60  ;;  %v909_v4 = vld [vmem:[%s1209_s17 + $0x50] sm:$0xf]  ;;  %v966_v5 = vld [vmem:[%s1209_s17 + $0x54] sm:$0xf0] }
  0x37   : > { %446 = vmatpush.bf16.msra.mxu1 %v1152_v23  ;;  %523 = vmatpush.bf16.msra.mxu3 %v1152_v23  ;;  %v926_v3 = vor.u32 %v967_v62, %v923_v63  ;;  %v965_v6 = vld [vmem:[%s1209_s17 + $0x54] sm:$0xf]  ;;  %v911_v7 = vld [vmem:[%s1209_s17 + $0x58] sm:$0xf0]  ;;  %v929_v8 = vld [vmem:[%s1209_s17 + $0x70] sm:$0xf]  ;;  %v910_v12 = vor.u32 %v966_v5, %v909_v4 }
  0x38   : > { %v970_v9 = vld [vmem:[%s1209_s17 + $0x74] sm:$0xf0]  ;;  %v969_v10 = vld [vmem:[%s1209_s17 + $0x74] sm:$0xf]  ;;  %v931_v11 = vld [vmem:[%s1209_s17 + $0x78] sm:$0xf0]  ;;  %v914_v13 = vor.u32 %v965_v6, %v911_v7 }
  0x39   : > { %v930_v14 = vor.u32 %v970_v9, %v929_v8  ;;  %v934_v15 = vor.u32 %v969_v10, %v931_v11 }
  0x3a   : > { %428 = vmatpush.bf16.msra.mxu0 %v1161_v24  ;;  %505 = vmatpush.bf16.msra.mxu2 %v1161_v24 }
  0x3b   : > { %447 = vmatpush.bf16.msra.mxu1 %v1166_v25  ;;  %524 = vmatpush.bf16.msra.mxu3 %v1166_v25 }
  0x3e   : > { %429 = vmatpush.bf16.msra.mxu0 %v1176_v26  ;;  %506 = vmatpush.bf16.msra.mxu2 %v1176_v26 }
  0x3f   : > { %448 = vmatpush.bf16.msra.mxu1 %v1181_v27  ;;  %525 = vmatpush.bf16.msra.mxu3 %v1181_v27 }
  0x42   : > { %430 = vmatpush.bf16.msra.mxu0 %v1190_v28  ;;  %507 = vmatpush.bf16.msra.mxu2 %v1190_v28 }
  0x43   : > { %449 = vmatpush.bf16.msra.mxu1 %v1195_v29  ;;  %526 = vmatpush.bf16.msra.mxu3 %v1195_v29 }
  0x46   : > { %431 = vmatpush.bf16.msra.mxu0 %v1202_v30  ;;  %508 = vmatpush.bf16.msra.mxu2 %v1202_v30 }
  0x47   : > { %450 = vmatpush.bf16.msra.mxu1 %v1207_v31  ;;  %527 = vmatpush.bf16.msra.mxu3 %v1207_v31 }
  0x49   : > { %432 = vmatmul.bf16.vlgmr.msra.gmra.mxu0 %v798_v40  ;;  %509 = vmatmul.bf16.vlgmr.msra.gmra.mxu2 %v882_v42 }
  0x4a   : > { %655 = vmatpush.bf16.msrb.mxu2 %v1107_v16  ;;  %580 = vmatpush.bf16.msrb.mxu0 %v1107_v16 }
  0x4b   : > { %451 = vmatmul.bf16.vlgmr.msra.gmra.mxu1 %v802_v41  ;;  %528 = vmatmul.bf16.vlgmr.msra.gmra.mxu3 %v886_v43 }
  0x4c   : > { %599 = vmatpush.bf16.msrb.mxu1 %v1112_v17  ;;  %674 = vmatpush.bf16.msrb.mxu3 %v1112_v17 }
  0x4e   : > { %656 = vmatpush.bf16.msrb.mxu2 %v1119_v18  ;;  %581 = vmatpush.bf16.msrb.mxu0 %v1119_v18 }
  0x50   : > { %600 = vmatpush.bf16.msrb.mxu1 %v1124_v19  ;;  %675 = vmatpush.bf16.msrb.mxu3 %v1124_v19 }
  0x52   : > { %657 = vmatpush.bf16.msrb.mxu2 %v1133_v20  ;;  %582 = vmatpush.bf16.msrb.mxu0 %v1133_v20 }
  0x54   : > { %601 = vmatpush.bf16.msrb.mxu1 %v1138_v21  ;;  %676 = vmatpush.bf16.msrb.mxu3 %v1138_v21 }
  0x56   : > { %658 = vmatpush.bf16.msrb.mxu2 %v1147_v22  ;;  %583 = vmatpush.bf16.msrb.mxu0 %v1147_v22 }
  0x58   : > { %602 = vmatpush.bf16.msrb.mxu1 %v1152_v23  ;;  %677 = vmatpush.bf16.msrb.mxu3 %v1152_v23 }
  0x59   : > { %437 = vmatmul.bf16.gmra.mxu0 %v806_v52  ;;  %514 = vmatmul.bf16.gmra.mxu2 %v890_v54 }
  0x5a   : > { %659 = vmatpush.bf16.msrb.mxu2 %v1161_v24  ;;  %584 = vmatpush.bf16.msrb.mxu0 %v1161_v24 }
  0x5b   : > { %456 = vmatmul.bf16.gmra.mxu1 %v810_v53  ;;  %533 = vmatmul.bf16.gmra.mxu3 %v894_v55 }
  0x5c   : > { %603 = vmatpush.bf16.msrb.mxu1 %v1166_v25  ;;  %678 = vmatpush.bf16.msrb.mxu3 %v1166_v25 }
  0x5e   : > { %660 = vmatpush.bf16.msrb.mxu2 %v1176_v26  ;;  %585 = vmatpush.bf16.msrb.mxu0 %v1176_v26 }
  0x60   : > { %604 = vmatpush.bf16.msrb.mxu1 %v1181_v27  ;;  %679 = vmatpush.bf16.msrb.mxu3 %v1181_v27 }
  0x62   : > { %661 = vmatpush.bf16.msrb.mxu2 %v1190_v28  ;;  %586 = vmatpush.bf16.msrb.mxu0 %v1190_v28 }
  0x64   : > { %605 = vmatpush.bf16.msrb.mxu1 %v1195_v29  ;;  %680 = vmatpush.bf16.msrb.mxu3 %v1195_v29 }
  0x66   : > { %662 = vmatpush.bf16.msrb.mxu2 %v1202_v30  ;;  %587 = vmatpush.bf16.msrb.mxu0 %v1202_v30  ;;  %v270_v30 = vld [vmem:[%s1380_s2] sm:$0xff] }
  0x67   : > { %v1296_v34 = vperm.slane %v270_v30, 0  ;;  %v1305_v57 = vperm.slane %v270_v30, 1  ;;  %v1313_v5 = vperm.slane %v270_v30, 2 }
  0x68   : > { %606 = vmatpush.bf16.msrb.mxu1 %v1207_v31  ;;  %681 = vmatpush.bf16.msrb.mxu3 %v1207_v31 }
  0x69   : > { %588 = vmatmul.bf16.vlgmr.msrb.gmra.mxu0 %v902_v0  ;;  %663 = vmatmul.bf16.vlgmr.msrb.gmra.mxu2 %v922_v2 }
  0x6b   : > { %607 = vmatmul.bf16.vlgmr.msrb.gmra.mxu1 %v906_v1  ;;  %682 = vmatmul.bf16.vlgmr.msrb.gmra.mxu3 %v926_v3 }
  0x79   : > { %593 = vmatmul.bf16.gmra.mxu0 %v910_v12  ;;  %668 = vmatmul.bf16.gmra.mxu2 %v930_v14 }
  0x7b   : > { %612 = vmatmul.bf16.gmra.mxu1 %v914_v13  ;;  %687 = vmatmul.bf16.gmra.mxu3 %v934_v15 }
  0xc6   : > { %v433_v16 = vpop.f32.mrf.mxu0 }
  0xc7   : > { %v434_v37 = vadd.f32 %v433_v16, %v1296_v34 }
  0xc8   : > { %v452_v17 = vpop.f32.mrf.mxu1 }
  0xc9   : > { %v453_v46 = vadd.f32 %v452_v17, %v434_v37 }
  0xcb   : > { %v462_v56 = vmax.f32 %v453_v46, 0.0 }
  0xcc   : > { %v510_v18 = vpop.f32.mrf.mxu2 }
  0xcd   : > { %v511_v38 = vadd.f32 %v510_v18, %v1296_v34  ;;  %v467_v4 = vmul.f32 %v1305_v57, %v462_v56 }
  0xce   : > { %v529_v19 = vpop.f32.mrf.mxu3  ;;  %v435_v20 = vpop.f32.mrf.mxu0 }
  0xcf   : > { %v436_v40 = vadd.f32 %v435_v20, %v1296_v34  ;;  %v530_v47 = vadd.f32 %v529_v19, %v511_v38  ;;  %v472_v16 = vadd.f32 %v1313_v5, %v467_v4 }
  0xd0   : > { %v454_v21 = vpop.f32.mrf.mxu1 }
  0xd1   : > { %v455_v52 = vadd.f32 %v454_v21, %v436_v40  ;;  %v539_v58 = vmax.f32 %v530_v47, 0.0 }
  0xd3   : > { %v463_v60 = vmax.f32 %v455_v52, 0.0  ;;  %v543_v6 = vmul.f32 %v539_v58, %v1305_v57 }
  0xd4   : > { %v512_v22 = vpop.f32.mrf.mxu2 }
  0xd5   : > { %v513_v39 = vadd.f32 %v512_v22, %v1296_v34  ;;  %v468_v10 = vmul.f32 %v1305_v57, %v463_v60  ;;  %v547_v17 = vadd.f32 %v543_v6, %v1313_v5 }
  0xd6   : > { %v531_v23 = vpop.f32.mrf.mxu3  ;;  %v438_v24 = vpop.f32.mrf.mxu0 }
  0xd7   : > { %v532_v48 = vadd.f32 %v531_v23, %v513_v39  ;;  %v439_v19 = vadd.f32 %v438_v24, %v1296_v34  ;;  %v473_v23 = vadd.f32 %v1313_v5, %v468_v10  ;;  %v551_v39 = vmax.f32 %v472_v16, %v547_v17 }
  0xd8   : > { %v1283_v25 = vpop.f32.mrf.mxu1 }
  0xd9   : > { %v540_v59 = vmax.f32 %v532_v48, 0.0 }
  0xdb   : > { %v544_v7 = vmul.f32 %v540_v59, %v1305_v57 }
  0xdc   : > { %v515_v26 = vpop.f32.mrf.mxu2 }
  0xdd   : > { %v548_v18 = vadd.f32 %v544_v7, %v1313_v5  ;;  %v516_v20 = vadd.f32 %v515_v26, %v1296_v34 }
  0xde   : > { %v1285_v27 = vpop.f32.mrf.mxu3  ;;  %v1287_v28 = vpop.f32.mrf.mxu0 }
  0xdf   : > { %v441_v30 = vadd.f32 %v1287_v28, %v1296_v34  ;;  %v552_v40 = vmax.f32 %v473_v23, %v548_v18 }
  0xe0   : > { %v1289_v29 = vpop.f32.mrf.mxu1 }
  0xe1   : > { %v460_v46 = vadd.f32 %v1289_v29, %v441_v30 }
  0xe4   : > { %v517_v31 = vpop.f32.mrf.mxu2 }
  0xe5   : > { %v518_v21 = vadd.f32 %v517_v31, %v1296_v34 }
  0xe6   : > { %v1294_v32 = vpop.f32.mrf.mxu3  ;;  %v589_v33 = vpop.f32.mrf.mxu0 }
  0xe7   : > { %v590_v36 = vadd.f32 %v589_v33, %v1296_v34  ;;  %v537_v28 = vadd.f32 %v1294_v32, %v518_v21 }
  0xe8   : > { %v608_v35 = vpop.f32.mrf.mxu1 }
  0xe9   : > { %v609_v41 = vadd.f32 %v608_v35, %v590_v36  ;;  %v542_v32 = vmax.f32 %v537_v28, 0.0 }
  0xeb   : > { %v618_v53 = vmax.f32 %v609_v41, 0.0  ;;  %v458_v41 = vadd.f32 %v1283_v25, %v439_v19 }
  0xec   : > { %v664_v42 = vpop.f32.mrf.mxu2 }
  0xed   : > { %v665_v43 = vadd.f32 %v664_v42, %v1296_v34  ;;  %v622_v61 = vmul.f32 %v618_v53, %v1305_v57  ;;  %v464_v25 = vmax.f32 %v458_v41, 0.0 }
  0xee   : > { %v683_v44 = vpop.f32.mrf.mxu3  ;;  %v591_v45 = vpop.f32.mrf.mxu0 }
  0xef   : > { %v592_v49 = vadd.f32 %v591_v45, %v1296_v34  ;;  %v684_v51 = vadd.f32 %v683_v44, %v665_v43  ;;  %v626_v11 = vadd.f32 %v622_v61, %v1313_v5  ;;  %v535_v43 = vadd.f32 %v1285_v27, %v516_v20 }
  0xf0   : > { %v610_v50 = vpop.f32.mrf.mxu1  ;;  %v469_v61 = vmul.f32 %v1305_v57, %v464_v25 }
  0xf1   : > { %v693_v54 = vmax.f32 %v684_v51, 0.0  ;;  %v611_v55 = vadd.f32 %v610_v50, %v592_v49  ;;  %v541_v27 = vmax.f32 %v535_v43, 0.0 }
  0xf3   : > { %v697_v62 = vmul.f32 %v693_v54, %v1305_v57  ;;  %v619_v0 = vmax.f32 %v611_v55, 0.0  ;;  %v465_v54 = vmax.f32 %v460_v46, 0.0 }
  0xf4   : > { %v666_v63 = vpop.f32.mrf.mxu2 }
  0xf5   : > { %v667_v1 = vadd.f32 %v666_v63, %v1296_v34  ;;  %v701_v12 = vadd.f32 %v697_v62, %v1313_v5  ;;  %v623_v13 = vmul.f32 %v619_v0, %v1305_v57  ;;  %v545_v62 = vmul.f32 %v541_v27, %v1305_v57 }
  0xf6   : > { %v685_v2 = vpop.f32.mrf.mxu3  ;;  %v594_v3 = vpop.f32.mrf.mxu0  ;;  %v546_v63 = vmul.f32 %v542_v32, %v1305_v57 }
  0xf7   : > { %v686_v9 = vadd.f32 %v685_v2, %v667_v1  ;;  %v595_v15 = vadd.f32 %v594_v3, %v1296_v34  ;;  %v705_v33 = vmax.f32 %v626_v11, %v701_v12  ;;  %v627_v36 = vadd.f32 %v623_v13, %v1313_v5 }
  0xf8   : > { %v613_v8 = vpop.f32.mrf.mxu1  ;;  %v470_v1 = vmul.f32 %v1305_v57, %v465_v54  ;;  %v549_v7 = vadd.f32 %v545_v62, %v1313_v5 }
  0xf9   : > { %v694_v14 = vmax.f32 %v686_v9, 0.0  ;;  %v614_v26 = vadd.f32 %v613_v8, %v595_v15  ;;  %v709_v47 = vmax.f32 %v551_v39, %v705_v33  ;;  %v550_v8 = vadd.f32 %v546_v63, %v1313_v5 }
  0xfa   : > { %v475_v10 = vadd.f32 %v1313_v5, %v470_v1 }
  0xfb   : > { %v698_v22 = vmul.f32 %v694_v14, %v1305_v57  ;;  %v620_v50 = vmax.f32 %v614_v26, 0.0 }
  0xfc   : > { %v669_v35 = vpop.f32.mrf.mxu2  ;;  %v554_v15 = vmax.f32 %v475_v10, %v550_v8 }
  0xfd   : > { %v702_v24 = vadd.f32 %v698_v22, %v1313_v5  ;;  %v670_v31 = vadd.f32 %v669_v35, %v1296_v34  ;;  %v624_v29 = vmul.f32 %v620_v50, %v1305_v57 }
  0xfe   : > { %v688_v37 = vpop.f32.mrf.mxu3  ;;  %v596_v38 = vpop.f32.mrf.mxu0 }
  0xff   : > { %v597_v42 = vadd.f32 %v596_v38, %v1296_v34  ;;  %v706_v44 = vmax.f32 %v627_v36, %v702_v24  ;;  %v689_v45 = vadd.f32 %v688_v37, %v670_v31  ;;  %v628_v2 = vadd.f32 %v624_v29, %v1313_v5 }
 0x100   : > { %v615_v48 = vpop.f32.mrf.mxu1 }
 0x101   : > { %v710_v49 = vmax.f32 %v552_v40, %v706_v44  ;;  %v695_v51 = vmax.f32 %v689_v45, 0.0  ;;  %v616_v52 = vadd.f32 %v615_v48, %v597_v42 }
 0x103   : > { %v974_v53 = vpack.c.bf16 %v710_v49, %v709_v47  ;;  %v699_v56 = vmul.f32 %v695_v51, %v1305_v57  ;;  %v621_v58 = vmax.f32 %v616_v52, 0.0 }
 0x104   : > { %v671_v55 = vpop.f32.mrf.mxu2 }
 0x105   : > { %975 = vst [vmem:[%s1347_s23] sm:$0xff] %v974_v53   ;;  %v672_v59 = vadd.f32 %v671_v55, %v1296_v34  ;;  %v703_v3 = vadd.f32 %v699_v56, %v1313_v5  ;;  %v625_v4 = vmul.f32 %v621_v58, %v1305_v57  ;;  %v474_v34 = vadd.f32 %v1313_v5, %v469_v61 }
 0x106   : > { %v690_v60 = vpop.f32.mrf.mxu3 }
 0x107   : > { %v691_v0 = vadd.f32 %v690_v60, %v672_v59  ;;  %v707_v11 = vmax.f32 %v628_v2, %v703_v3  ;;  %v629_v12 = vadd.f32 %v625_v4, %v1313_v5  ;;  %v553_v14 = vmax.f32 %v474_v34, %v549_v7 }
 0x109   : > { %v696_v6 = vmax.f32 %v691_v0, 0.0  ;;  %v711_v17 = vmax.f32 %v553_v14, %v707_v11 }
 0x10b   : > { %v700_v9 = vmul.f32 %v696_v6, %v1305_v57 }
 0x10d   : > { %v704_v13 = vadd.f32 %v700_v9, %v1313_v5 }
 0x10f   : > { %v708_v16 = vmax.f32 %v629_v12, %v704_v13 }
 0x111   : > { %v712_v18 = vmax.f32 %v554_v15, %v708_v16 }
 0x113   : > { %v979_v19 = vpack.c.bf16 %v712_v18, %v711_v17 }
 0x115   : > { %981 = vst [vmem:[%s1347_s23 + $0x8] sm:$0xff] %v979_v19  }
 0x116 PF: > { %p10_p9 = scmp.ge.s32.totalorder %s1067_s16, 4   ;;  %s1382_s12 = smov %s1024_s13 }
 0x117   : > { %s1383_s13 = smov %s1076_s19  ;;  %s1384_s14 = smov %s1067_s16 }
 0x118   :  { %12 = sbr.rel (!%p10_p9) target bundleno = 2 (0x2), region = 108 }

// kernel: lenet_forward.5
= control target key start
LH: loop header
LB: loop body
LE: loop exit
PB: predicated region body
PF: predicated region fallthrough
CT: control target
= control target key end

     0   :  { %s1016_s1 = inlined_call_operand.vmem [shape: bf16[512,128], index: 1, kind: input, shape index: {}]   ;;  %s1017_s0 = inlined_call_operand.vmem [shape: bf16[16,512], index: 0, kind: input, shape index: {}]   ;;  %s1018_s2 = inlined_call_operand.vmem [shape: bf16[128,128], index: 2, kind: input, shape index: {}]   ;;  %s1019_s4 = inlined_call_operand.vmem [shape: f32[8,128], index: 4, kind: input, shape index: {}]   ;;  %s1020_s3 = inlined_call_operand.vmem [shape: bf16[128,128], index: 3, kind: input, shape index: {}]   ;;  %s1021_s5 = inlined_call_operand.vmem [shape: f32[16,128], index: 5, kind: output, shape index: {}]  }
   0x1   :  { %v759_v0 = vld [vmem:[%s1016_s1 + $0x38] sm:$0xff]  ;;  %v758_v4 = vld [vmem:[%s1016_s1 + $0x30] sm:$0xff]  ;;  %v757_v8 = vld [vmem:[%s1016_s1 + $0x28] sm:$0xff] }
   0x2   :  { %v767_v1 = vld [vmem:[%s1016_s1 + $0x78] sm:$0xff]  ;;  %302 = vmatpush.bf16.msra.mxu0 %v759_v0  ;;  %v766_v5 = vld [vmem:[%s1016_s1 + $0x70] sm:$0xff]  ;;  %v765_v9 = vld [vmem:[%s1016_s1 + $0x68] sm:$0xff] }
   0x3   :  { %v775_v2 = vld [vmem:[%s1016_s1 + $0xb8] sm:$0xff]  ;;  %316 = vmatpush.bf16.msra.mxu1 %v767_v1  ;;  %v774_v6 = vld [vmem:[%s1016_s1 + $0xb0] sm:$0xff]  ;;  %v773_v10 = vld [vmem:[%s1016_s1 + $0xa8] sm:$0xff] }
   0x4   :  { %v783_v3 = vld [vmem:[%s1016_s1 + $0xf8] sm:$0xff]  ;;  %330 = vmatpush.bf16.msra.mxu2 %v775_v2  ;;  %v782_v7 = vld [vmem:[%s1016_s1 + $0xf0] sm:$0xff]  ;;  %v781_v11 = vld [vmem:[%s1016_s1 + $0xe8] sm:$0xff] }
   0x5   :  { %344 = vmatpush.bf16.msra.mxu3 %v783_v3  ;;  %v756_v12 = vld [vmem:[%s1016_s1 + $0x20] sm:$0xff]  ;;  %v755_v16 = vld [vmem:[%s1016_s1 + $0x18] sm:$0xff]  ;;  %v754_v20 = vld [vmem:[%s1016_s1 + $0x10] sm:$0xff] }
   0x6   :  { %303 = vmatpush.bf16.msra.mxu0 %v758_v4  ;;  %v764_v13 = vld [vmem:[%s1016_s1 + $0x60] sm:$0xff]  ;;  %v763_v17 = vld [vmem:[%s1016_s1 + $0x58] sm:$0xff]  ;;  %v762_v21 = vld [vmem:[%s1016_s1 + $0x50] sm:$0xff] }
   0x7   :  { %317 = vmatpush.bf16.msra.mxu1 %v766_v5  ;;  %v772_v14 = vld [vmem:[%s1016_s1 + $0xa0] sm:$0xff]  ;;  %v771_v18 = vld [vmem:[%s1016_s1 + $0x98] sm:$0xff]  ;;  %v770_v22 = vld [vmem:[%s1016_s1 + $0x90] sm:$0xff] }
   0x8   :  { %331 = vmatpush.bf16.msra.mxu2 %v774_v6  ;;  %v780_v15 = vld [vmem:[%s1016_s1 + $0xe0] sm:$0xff]  ;;  %v779_v19 = vld [vmem:[%s1016_s1 + $0xd8] sm:$0xff]  ;;  %v778_v23 = vld [vmem:[%s1016_s1 + $0xd0] sm:$0xff] }
   0x9   :  { %345 = vmatpush.bf16.msra.mxu3 %v782_v7  ;;  %v753_v24 = vld [vmem:[%s1016_s1 + $0x8] sm:$0xff]  ;;  %v752_v28 = vld [vmem:[%s1016_s1] sm:$0xff]  ;;  %v750_v33 = vld [vmem:[%s1017_s0 + $0xc] sm:$0xf0] }
   0xa   :  { %304 = vmatpush.bf16.msra.mxu0 %v757_v8  ;;  %v761_v25 = vld [vmem:[%s1016_s1 + $0x48] sm:$0xff]  ;;  %v760_v29 = vld [vmem:[%s1016_s1 + $0x40] sm:$0xff]  ;;  %v544_v35 = vld [vmem:[%s1017_s0 + $0x10] sm:$0xf0] }
   0xb   :  { %318 = vmatpush.bf16.msra.mxu1 %v765_v9  ;;  %v769_v26 = vld [vmem:[%s1016_s1 + $0x88] sm:$0xff]  ;;  %v768_v30 = vld [vmem:[%s1016_s1 + $0x80] sm:$0xff]  ;;  %v751_v37 = vld [vmem:[%s1017_s0 + $0x14] sm:$0xf0] }
   0xc   :  { %332 = vmatpush.bf16.msra.mxu2 %v773_v10  ;;  %v777_v27 = vld [vmem:[%s1016_s1 + $0xc8] sm:$0xff]  ;;  %v776_v31 = vld [vmem:[%s1016_s1 + $0xc0] sm:$0xff]  ;;  %v552_v39 = vld [vmem:[%s1017_s0 + $0x18] sm:$0xf0] }
   0xd   :  { %346 = vmatpush.bf16.msra.mxu3 %v781_v11  ;;  %v542_v32 = vld [vmem:[%s1017_s0] sm:$0xf]  ;;  %v748_v34 = vld [vmem:[%s1017_s0 + $0x4] sm:$0xf]  ;;  %v550_v36 = vld [vmem:[%s1017_s0 + $0x8] sm:$0xf] }
   0xe   :  { %305 = vmatpush.bf16.msra.mxu0 %v756_v12  ;;  %v749_v38 = vld [vmem:[%s1017_s0 + $0xc] sm:$0xf]  ;;  %v791_v40 = vld [vmem:[%s1018_s2 + $0x38] sm:$0xff]  ;;  %v543_v41 = vor.u32 %v750_v33, %v542_v32  ;;  %v547_v42 = vor.u32 %v748_v34, %v544_v35  ;;  %v551_v43 = vor.u32 %v751_v37, %v550_v36  ;;  %v790_v45 = vld [vmem:[%s1018_s2 + $0x30] sm:$0xff] }
   0xf   :  { %319 = vmatpush.bf16.msra.mxu1 %v764_v13  ;;  %v555_v44 = vor.u32 %v749_v38, %v552_v39  ;;  %v789_v46 = vld [vmem:[%s1018_s2 + $0x28] sm:$0xff]  ;;  %v788_v47 = vld [vmem:[%s1018_s2 + $0x20] sm:$0xff]  ;;  %v787_v48 = vld [vmem:[%s1018_s2 + $0x18] sm:$0xff] }
  0x10   :  { %333 = vmatpush.bf16.msra.mxu2 %v772_v14  ;;  %v786_v49 = vld [vmem:[%s1018_s2 + $0x10] sm:$0xff]  ;;  %v785_v50 = vld [vmem:[%s1018_s2 + $0x8] sm:$0xff]  ;;  %v784_v51 = vld [vmem:[%s1018_s2] sm:$0xff] }
  0x11   :  { %347 = vmatpush.bf16.msra.mxu3 %v780_v15  ;;  %v977_v52 = vld [vmem:[%s1019_s4] sm:$0xff]  ;;  %v799_v53 = vld [vmem:[%s1020_s3 + $0x38] sm:$0xff]  ;;  %v798_v55 = vld [vmem:[%s1020_s3 + $0x30] sm:$0xff] }
  0x12   :  { %306 = vmatpush.bf16.msra.mxu0 %v755_v16  ;;  %v89_v54 = vperm.slane %v977_v52, 0  ;;  %v797_v58 = vld [vmem:[%s1020_s3 + $0x28] sm:$0xff]  ;;  %v360_v7 = vperm.slane %v977_v52, 1  ;;  %v363_v12 = vperm.slane %v977_v52, 2  ;;  %v471_v37 = vperm.slane %v977_v52, 6 }
  0x13   :  { %320 = vmatpush.bf16.msra.mxu1 %v763_v17 }
  0x14   :  { %334 = vmatpush.bf16.msra.mxu2 %v771_v18  ;;  %v796_v18 = vld [vmem:[%s1020_s3 + $0x20] sm:$0xff] }
  0x15   :  { %348 = vmatpush.bf16.msra.mxu3 %v779_v19  ;;  %v795_v19 = vld [vmem:[%s1020_s3 + $0x18] sm:$0xff] }
  0x16   :  { %307 = vmatpush.bf16.msra.mxu0 %v754_v20  ;;  %v794_v20 = vld [vmem:[%s1020_s3 + $0x10] sm:$0xff] }
  0x17   :  { %321 = vmatpush.bf16.msra.mxu1 %v762_v21  ;;  %v793_v21 = vld [vmem:[%s1020_s3 + $0x8] sm:$0xff] }
  0x18   :  { %335 = vmatpush.bf16.msra.mxu2 %v770_v22  ;;  %v792_v22 = vld [vmem:[%s1020_s3] sm:$0xff] }
  0x19   :  { %349 = vmatpush.bf16.msra.mxu3 %v778_v23  ;;  %v383_v23 = vperm.slane %v977_v52, 3 }
  0x1a   :  { %308 = vmatpush.bf16.msra.mxu0 %v753_v24 }
  0x1b   :  { %322 = vmatpush.bf16.msra.mxu1 %v761_v25 }
  0x1c   :  { %336 = vmatpush.bf16.msra.mxu2 %v769_v26 }
  0x1d   :  { %350 = vmatpush.bf16.msra.mxu3 %v777_v27  ;;  %v448_v27 = vperm.slane %v977_v52, 4 }
  0x1e   :  { %309 = vmatpush.bf16.msra.mxu0 %v752_v28 }
  0x1f   :  { %323 = vmatpush.bf16.msra.mxu1 %v760_v29 }
  0x20   :  { %337 = vmatpush.bf16.msra.mxu2 %v768_v30 }
  0x21   :  { %351 = vmatpush.bf16.msra.mxu3 %v776_v31  ;;  %310 = vmatmul.bf16.vlgmr.msra.gmra.mxu0 %v543_v41  ;;  %v451_v31 = vperm.slane %v977_v52, 5 }
  0x22   :  { %432 = vmatpush.bf16.msrb.mxu0 %v791_v40  ;;  %324 = vmatmul.bf16.vlgmr.msra.gmra.mxu1 %v547_v42 }
  0x23   :  { %338 = vmatmul.bf16.vlgmr.msra.gmra.mxu2 %v551_v43  ;;  %520 = vmatpush.bf16.msrb.mxu1 %v799_v53 }
  0x24   :  { %352 = vmatmul.bf16.vlgmr.msra.gmra.mxu3 %v555_v44 }
  0x26   :  { %433 = vmatpush.bf16.msrb.mxu0 %v790_v45 }
  0x27   :  { %521 = vmatpush.bf16.msrb.mxu1 %v798_v55 }
  0x2a   :  { %434 = vmatpush.bf16.msrb.mxu0 %v789_v46 }
  0x2b   :  { %522 = vmatpush.bf16.msrb.mxu1 %v797_v58 }
  0x2e   :  { %435 = vmatpush.bf16.msrb.mxu0 %v788_v47 }
  0x2f   :  { %523 = vmatpush.bf16.msrb.mxu1 %v796_v18 }
  0x32   :  { %436 = vmatpush.bf16.msrb.mxu0 %v787_v48 }
  0x33   :  { %524 = vmatpush.bf16.msrb.mxu1 %v795_v19 }
  0x36   :  { %437 = vmatpush.bf16.msrb.mxu0 %v786_v49 }
  0x37   :  { %525 = vmatpush.bf16.msrb.mxu1 %v794_v20 }
  0x3a   :  { %438 = vmatpush.bf16.msrb.mxu0 %v785_v50 }
  0x3b   :  { %526 = vmatpush.bf16.msrb.mxu1 %v793_v21 }
  0x3e   :  { %439 = vmatpush.bf16.msrb.mxu0 %v784_v51 }
  0x3f   :  { %527 = vmatpush.bf16.msrb.mxu1 %v792_v22 }
  0x9e   :  { %v311_v56 = vpop.f32.mrf.mxu0 }
  0x9f   :  { %v312_v57 = vadd.f32 %v311_v56, %v89_v54  ;;  %v325_v59 = vpop.f32.mrf.mxu1 }
  0xa1   :  { %v326_v60 = vadd.f32 %v325_v59, %v312_v57 }
  0xa6   :  { %v339_v61 = vpop.f32.mrf.mxu2  ;;  %v313_v0 = vpop.f32.mrf.mxu0 }
  0xa7   :  { %v353_v62 = vpop.f32.mrf.mxu3  ;;  %v340_v63 = vadd.f32 %v339_v61, %v326_v60  ;;  %v314_v1 = vadd.f32 %v313_v0, %v89_v54  ;;  %v327_v3 = vpop.f32.mrf.mxu1 }
  0xa9   :  { %v354_v2 = vadd.f32 %v353_v62, %v340_v63  ;;  %v328_v4 = vadd.f32 %v327_v3, %v314_v1 }
  0xab   :  { %v358_v6 = vmax.f32 %v354_v2, 0.0 }
  0xad   :  { %v361_v11 = vmul.f32 %v360_v7, %v358_v6 }
  0xae   :  { %v341_v5 = vpop.f32.mrf.mxu2 }
  0xaf   :  { %v342_v8 = vadd.f32 %v341_v5, %v328_v4  ;;  %v355_v9 = vpop.f32.mrf.mxu3  ;;  %v364_v15 = vadd.f32 %v363_v12, %v361_v11 }
  0xb1   :  { %v356_v10 = vadd.f32 %v355_v9, %v342_v8 }
  0xb3   :  { %v359_v13 = vmax.f32 %v356_v10, 0.0 }
  0xb5   :  { %v362_v14 = vmul.f32 %v360_v7, %v359_v13 }
  0xb7   :  { %v365_v16 = vadd.f32 %v363_v12, %v362_v14 }
  0xb9   :  { %v366_v17 = vpack.c.bf16 %v365_v16, %v364_v15 }
  0xbb   :  { %440 = vmatmul.bf16.vlgmr.msrb.gmra.mxu0 %v366_v17 }
 0x138   :  { %v441_v24 = vpop.f32.mrf.mxu0 }
 0x139   :  { %v442_v25 = vadd.f32 %v441_v24, %v383_v23 }
 0x13b   :  { %v446_v26 = vmax.f32 %v442_v25, 0.0 }
 0x13d   :  { %v449_v30 = vmul.f32 %v448_v27, %v446_v26 }
 0x13f   :  { %v452_v34 = vadd.f32 %v451_v31, %v449_v30 }
 0x140   :  { %v443_v28 = vpop.f32.mrf.mxu0 }
 0x141   :  { %v444_v29 = vadd.f32 %v443_v28, %v383_v23 }
 0x143   :  { %v447_v32 = vmax.f32 %v444_v29, 0.0 }
 0x145   :  { %v450_v33 = vmul.f32 %v448_v27, %v447_v32 }
 0x147   :  { %v453_v35 = vadd.f32 %v451_v31, %v450_v33 }
 0x149   :  { %v454_v36 = vpack.c.bf16 %v453_v35, %v452_v34 }
 0x14b   :  { %528 = vmatmul.bf16.vlgmr.msrb.gmra.mxu1 %v454_v36 }
 0x1c8   :  { %v529_v38 = vpop.f32.mrf.mxu1 }
 0x1c9   :  { %v530_v39 = vadd.f32 %v529_v38, %v471_v37 }
 0x1cb   :  { %534 = vst [vmem:[%s1021_s5] sm:$0xff] %v530_v39 }
 0x1d0   :  { %v531_v40 = vpop.f32.mrf.mxu1 }
 0x1d1   :  { %v532_v41 = vadd.f32 %v531_v40, %v471_v37 }
 0x1d3   :  { %535 = vst [vmem:[%s1021_s5 + $0x8] sm:$0xff] %v532_v41 }

</bundles_post_ra>
